<compile_context>
chip_gen: v5e
topology: v5e:2x2
jax: 0.10.0
libtpu: 0.0.40
codegen_flags: <defaults>
</compile_context>

<pallas_src>
import numpy as np
import jax
import jax.numpy as jnp
from jax import lax
from jax.experimental import pallas as pl
from jax.experimental.pallas import tpu as pltpu


def _make_kernel(bb, T, H):
    """Fused CNN + LSTM + FC kernel for one block of `bb` batch rows."""
    f32, bf16 = jnp.float32, jnp.bfloat16
    Tp = T // 2
    n_rows = bb * T
    G = 4 * H

    def kernel(x_ref, w1_ref, b1_ref, w2_ref, b2_ref,
               wih_ref, whh_ref, bl_ref, wfc_ref, bfc_ref, out_ref):
        # Rows are time-major within the block: row = t*bb + b.
        x = x_ref[...]                                      # (n_rows, F) f32

        # In-kernel boundary masks: cheap iota + compare (no extra inputs).
        row = lax.broadcasted_iota(jnp.int32, (n_rows, 1), 0)
        not_first = row >= bb                               # t > 0
        not_last = row < (n_rows - bb)                      # t < T-1

        def conv3_relu(v, w_ref, b_ref):
            # Conv1d(k=3, pad=1), channels-last.  +-1 time shifts are rolls by
            # bb rows (XLU) with jnp.where boundary zeroing; the 3 taps are
            # fused into one bf16 matmul with f32 accumulation.
            vm1 = jnp.where(not_first, pltpu.roll(v, bb, 0), 0.0)
            vp1 = jnp.where(not_last, pltpu.roll(v, n_rows - bb, 0), 0.0)
            taps = jnp.concatenate([vm1, v, vp1], axis=1).astype(bf16)
            y = jnp.dot(taps, w_ref[...], preferred_element_type=f32) + b_ref[...]
            return jnp.maximum(y, 0.0)                      # f32

        h1 = conv3_relu(x, w1_ref, b1_ref)                  # (n_rows, 32)
        h2 = conv3_relu(h1, w2_ref, b2_ref)                 # (n_rows, 64)

        # MaxPool1d(2): time pair (2t, 2t+1) == rows (r, r+bb); the pooled
        # value for step t lands in rows [2t*bb, 2t*bb+bb).  Rows that see the
        # roll wrap-around are never read below.
        m = jnp.maximum(h2, pltpu.roll(h2, n_rows - bb, 0))  # (n_rows, 64) f32

        # Hoisted LSTM input->hidden projection (fused gate layout, lane-dense
        # 4H = 128 columns), kept live in vregs.
        gx = (jnp.dot(m.astype(bf16), wih_ref[...], preferred_element_type=f32)
              + bl_ref[...])                                # (n_rows, 4H) f32

        whh = whh_ref[...]                                  # (H, 4H) f32
        h = jnp.zeros((bb, H), f32)
        c = jnp.zeros((bb, H), f32)
        # Tp is small and static -> full unroll.  PyTorch gate order: i,f,g,o.
        for t in range(Tp):
            r0 = 2 * t * bb
            z = gx[r0:r0 + bb] + jnp.dot(h, whh, preferred_element_type=f32)
            i = jax.nn.sigmoid(z[:, 0 * H:1 * H])
            f = jax.nn.sigmoid(z[:, 1 * H:2 * H])
            g = jnp.tanh(z[:, 2 * H:3 * H])
            o = jax.nn.sigmoid(z[:, 3 * H:4 * H])
            c = f * c + i * g
            h = o * jnp.tanh(c)

        # fc on the last hidden state; one lane-dense (bb, 128) store (padded
        # columns are sliced off outside the pallas_call).
        out_ref[...] = (jnp.dot(h, wfc_ref[...], preferred_element_type=f32)
                        + bfc_ref[...])

    return kernel


def cnn_lstm_forward(x, params, *, batch_block=None):
    w1, b1, w2, b2, wih, whh, bl, wfc, bfc = params
    B, T, F = x.shape
    assert T % 2 == 0, "MaxPool1d(2) path assumes an even sequence length"
    Tp = T // 2
    C1 = w1.shape[2]                  # 32
    C2 = w2.shape[2]                  # 64
    H = whh.shape[2]
    NC = wfc.shape[1]
    G = 4 * H
    NCP = 128                         # lane-dense padded fc output width

    # Batch block: aim for >=4 grid steps (DMA pipelining / megacore) with a
    # sublane-aligned block; fall back to the whole batch for small B.
    if batch_block is None:
        cands = [d for d in range(8, B + 1, 8)
                 if B % d == 0 and d <= 64 and B // d >= 4]
        bb = max(cands) if cands else B
    else:
        bb = batch_block
        assert B % bb == 0 and (bb == B or bb % 8 == 0)
    nblk = B // bb
    n_rows = bb * T

    f32, bf16 = jnp.float32, jnp.bfloat16

    # ---- one-time wrapper-side layout prep (plain XLA ops, outside kernel) ----
    # Time-major-within-block row order: block i, row t*bb + b.
    x_perm = (x.astype(f32).reshape(nblk, bb, T, F)
              .transpose(0, 2, 1, 3).reshape(B * T, F))
    w1f = w1.reshape(3 * F, C1).astype(bf16)          # rows: [tap t-1 | t | t+1]
    w2f = w2.reshape(3 * C1, C2).astype(bf16)
    wih_all = jnp.concatenate([wih[g] for g in range(4)], axis=1).astype(bf16)  # (C2,4H)
    whh_all = jnp.concatenate([whh[g] for g in range(4)], axis=1).astype(f32)   # (H,4H)
    bl_all = bl.reshape(1, G).astype(f32)
    b1f = b1.astype(f32)
    b2f = b2.astype(f32)
    wfc_p = jnp.zeros((H, NCP), f32).at[:, :NC].set(wfc.astype(f32))
    bfc_p = jnp.zeros((1, NCP), f32).at[:, :NC].set(bfc.astype(f32))

    kernel = _make_kernel(bb, T, H)
    rep = lambda i: (0, 0)                            # block-invariant operands

    flops = (2 * B * T * (3 * F * C1 + 3 * C1 * C2 + C2 * G)
             + 2 * B * Tp * H * G + 2 * B * H * NCP)
    transcendentals = 5 * B * Tp * H                  # 3 sigmoid + 2 tanh per step
    bytes_accessed = (x_perm.size * 4 + B * NCP * 4
                      + (w1f.size + w2f.size + wih_all.size) * 2
                      + (whh_all.size + wfc_p.size) * 4
                      + (C1 + C2 + G + NCP) * 4)

    out = pl.pallas_call(
        kernel,
        out_shape=jax.ShapeDtypeStruct((B, NCP), f32),
        grid=(nblk,),
        in_specs=[
            pl.BlockSpec((n_rows, F), lambda i: (i, 0)),  # this block's rows
            pl.BlockSpec((3 * F, C1), rep),               # conv1 weight (fused taps, bf16)
            pl.BlockSpec((1, C1), rep),                   # conv1 bias
            pl.BlockSpec((3 * C1, C2), rep),              # conv2 weight (bf16)
            pl.BlockSpec((1, C2), rep),                   # conv2 bias
            pl.BlockSpec((C2, G), rep),                   # LSTM W_ih (fused gates, bf16)
            pl.BlockSpec((H, G), rep),                    # LSTM W_hh (fused gates, f32)
            pl.BlockSpec((1, G), rep),                    # LSTM bias (b_ih + b_hh)
            pl.BlockSpec((H, NCP), rep),                  # fc weight (lane-padded)
            pl.BlockSpec((1, NCP), rep),                  # fc bias (lane-padded)
        ],
        out_specs=pl.BlockSpec((bb, NCP), lambda i: (i, 0)),
        compiler_params=pltpu.CompilerParams(
            dimension_semantics=("parallel",)),           # batch blocks independent
        cost_estimate=pl.CostEstimate(
            flops=int(flops), transcendentals=int(transcendentals),
            bytes_accessed=int(bytes_accessed)),
    )(x_perm, w1f, b1f, w2f, b2f, wih_all, whh_all, bl_all, wfc_p, bfc_p)
    return out[:, :NC]


def reference(x, params):
    # Pure-JAX f32 reference with identical semantics (correctness check).
    w1, b1, w2, b2, wih, whh, bl, wfc, bfc = params
    B, T, F = x.shape

    def conv3_relu(v, w, b):
        vm1 = jnp.pad(v, ((0, 0), (1, 0), (0, 0)))[:, :T]
        vp1 = jnp.pad(v, ((0, 0), (0, 1), (0, 0)))[:, 1:]
        y = (jnp.einsum('btc,cd->btd', vm1, w[0])
             + jnp.einsum('btc,cd->btd', v, w[1])
             + jnp.einsum('btc,cd->btd', vp1, w[2]) + b[None])
        return jnp.maximum(y, 0.0)

    h1 = conv3_relu(x, w1, b1)
    h2 = conv3_relu(h1, w2, b2)
    pooled = jnp.maximum(h2[:, 0::2], h2[:, 1::2])
    Tp = T // 2
    H = whh.shape[2]
    h = jnp.zeros((B, H), jnp.float32)
    c = jnp.zeros((B, H), jnp.float32)
    for t in range(Tp):
        x_t = pooled[:, t]
        i = jax.nn.sigmoid(x_t @ wih[0] + h @ whh[0] + bl[0])
        f = jax.nn.sigmoid(x_t @ wih[1] + h @ whh[1] + bl[1])
        g = jnp.tanh(x_t @ wih[2] + h @ whh[2] + bl[2])
        o = jax.nn.sigmoid(x_t @ wih[3] + h @ whh[3] + bl[3])
        c = f * c + i * g
        h = o * jnp.tanh(c)
    return h @ wfc + bfc


if __name__ == "__main__":
    # Small shapes consistent with the module: in_channels fixed to 8 by conv1.
    B, T, F = 2, 16, 8          # batch, sequence length, input features (=8)
    H, NC = 32, 4               # hidden_size, num_classes

    key = jax.random.PRNGKey(0)
    ks = jax.random.split(key, 10)

    def init(k, shape, scale=0.1):
        return (scale * jax.random.normal(k, shape)).astype(jnp.float32)

    # Deterministic synthetic parameters (shapes follow the PyTorch module).
    w1 = init(ks[0], (3, F, 32))        # conv1 weight, tap-major channels-last
    b1 = init(ks[1], (1, 32))
    w2 = init(ks[2], (3, 32, 64))       # conv2 weight
    b2 = init(ks[3], (1, 64))
    wih = init(ks[4], (4, 64, H))       # LSTM input weights, gate order i,f,g,o
    whh = init(ks[5], (4, H, H))        # LSTM hidden weights
    bl = init(ks[6], (4, 1, H))         # combined (b_ih + b_hh) per gate
    wfc = init(ks[7], (H, NC))          # fc weight (transposed vs torch)
    bfc = init(ks[8], (1, NC))
    x = init(ks[9], (B, T, F), scale=1.0)

    params = (w1, b1, w2, b2, wih, whh, bl, wfc, bfc)

    out = jax.block_until_ready(cnn_lstm_forward(x, params))
    assert out.shape == (B, NC)

    ref = reference(x, params)
    # bf16 MXU operands on the conv / input-projection matmuls -> ~1e-2 abs tol.
    np.testing.assert_allclose(np.asarray(out), np.asarray(ref),
                               rtol=2e-2, atol=2e-2)
    print("KERNEL_OK")
</pallas_src>

<mosaic_0001>
module attributes {stable_mosaic.version = 11 : i64} {
  func.func @kernel(%arg0: i32, %arg1: memref<32x8xf32, #tpu.memory_space<vmem>>, %arg2: memref<24x32xbf16, #tpu.memory_space<vmem>>, %arg3: memref<1x32xf32, #tpu.memory_space<vmem>>, %arg4: memref<96x64xbf16, #tpu.memory_space<vmem>>, %arg5: memref<1x64xf32, #tpu.memory_space<vmem>>, %arg6: memref<64x128xbf16, #tpu.memory_space<vmem>>, %arg7: memref<32x128xf32, #tpu.memory_space<vmem>>, %arg8: memref<1x128xf32, #tpu.memory_space<vmem>>, %arg9: memref<32x128xf32, #tpu.memory_space<vmem>>, %arg10: memref<1x128xf32, #tpu.memory_space<vmem>>, %arg11: memref<2x128xf32, #tpu.memory_space<vmem>>) attributes {dimension_semantics = [#tpu.dimension_semantics<parallel>], iteration_bounds = array<i64: 1>, scalar_prefetch = 0 : i64, scratch_operands = 0 : i64, tpu.core_type = #tpu.core_type<tc>, window_params = [{transform_indices = @transform_0, window_bounds = array<i64: 32, 8>}, {pipeline_mode = #tpu.pipeline_mode<synchronous>, transform_indices = @transform_1, window_bounds = array<i64: 24, 32>}, {pipeline_mode = #tpu.pipeline_mode<synchronous>, transform_indices = @transform_2, window_bounds = array<i64: 1, 32>}, {pipeline_mode = #tpu.pipeline_mode<synchronous>, transform_indices = @transform_3, window_bounds = array<i64: 96, 64>}, {pipeline_mode = #tpu.pipeline_mode<synchronous>, transform_indices = @transform_4, window_bounds = array<i64: 1, 64>}, {pipeline_mode = #tpu.pipeline_mode<synchronous>, transform_indices = @transform_5, window_bounds = array<i64: 64, 128>}, {pipeline_mode = #tpu.pipeline_mode<synchronous>, transform_indices = @transform_6, window_bounds = array<i64: 32, 128>}, {pipeline_mode = #tpu.pipeline_mode<synchronous>, transform_indices = @transform_7, window_bounds = array<i64: 1, 128>}, {pipeline_mode = #tpu.pipeline_mode<synchronous>, transform_indices = @transform_8, window_bounds = array<i64: 32, 128>}, {pipeline_mode = #tpu.pipeline_mode<synchronous>, transform_indices = @transform_9, window_bounds = array<i64: 1, 128>}, {transform_indices = @transform_10, window_bounds = array<i64: 2, 128>}]} {
    %c0 = arith.constant 0 : index
    %c0_0 = arith.constant 0 : index
    %0 = vector.load %arg1[%c0, %c0_0] : memref<32x8xf32, #tpu.memory_space<vmem>>, vector<32x8xf32>
    %1 = tpu.iota {dimensions = array<i32: 0>} : vector<32x1xi32>
    %c2_i32 = arith.constant 2 : i32
    %2 = vector.broadcast %c2_i32 : i32 to vector<32x1xi32>
    %3 = arith.cmpi sge, %1, %2 : vector<32x1xi32>
    %c30_i32 = arith.constant 30 : i32
    %4 = vector.broadcast %c30_i32 : i32 to vector<32x1xi32>
    %5 = arith.cmpi slt, %1, %4 : vector<32x1xi32>
    %c2_i32_1 = arith.constant 2 : i32
    %6 = tpu.dynamic_rotate %0 by %c2_i32_1 dim 0 : vector<32x8xf32>, i32 -> vector<32x8xf32>
    %cst = arith.constant 0.000000e+00 : f32
    %7 = vector.shape_cast %3 : vector<32x1xi1> to vector<32x1xi1>
    %8 = vector.broadcast %7 : vector<32x1xi1> to vector<32x8xi1>
    %9 = vector.broadcast %cst : f32 to vector<32x8xf32>
    %10 = arith.select %8, %6, %9 : vector<32x8xi1>, vector<32x8xf32>
    %c30_i32_2 = arith.constant 30 : i32
    %11 = tpu.dynamic_rotate %0 by %c30_i32_2 dim 0 : vector<32x8xf32>, i32 -> vector<32x8xf32>
    %cst_3 = arith.constant 0.000000e+00 : f32
    %12 = vector.shape_cast %5 : vector<32x1xi1> to vector<32x1xi1>
    %13 = vector.broadcast %12 : vector<32x1xi1> to vector<32x8xi1>
    %14 = vector.broadcast %cst_3 : f32 to vector<32x8xf32>
    %15 = arith.select %13, %11, %14 : vector<32x8xi1>, vector<32x8xf32>
    %16 = tpu.concatenate %10, %0, %15 in 1 : vector<32x8xf32>, vector<32x8xf32>, vector<32x8xf32> -> vector<32x24xf32>
    %17 = arith.truncf %16 : vector<32x24xf32> to vector<32x24xbf16>
    %c0_4 = arith.constant 0 : index
    %c0_5 = arith.constant 0 : index
    %18 = vector.load %arg2[%c0_4, %c0_5] : memref<24x32xbf16, #tpu.memory_space<vmem>>, vector<24x32xbf16>
    %cst_6 = arith.constant dense<0.000000e+00> : vector<32x32xf32>
    %19 = tpu.matmul %17, %18, %cst_6 {dimension_numbers = #tpu.dot_dimension_numbers<[1], [0], [0], [1], [0, 0, 1, 1], [], []>} : vector<32x24xbf16>, vector<24x32xbf16>, vector<32x32xf32> -> vector<32x32xf32>
    %c0_7 = arith.constant 0 : index
    %c0_8 = arith.constant 0 : index
    %20 = vector.load %arg3[%c0_7, %c0_8] : memref<1x32xf32, #tpu.memory_space<vmem>>, vector<1x32xf32>
    %21 = vector.broadcast %20 : vector<1x32xf32> to vector<32x32xf32>
    %22 = arith.addf %19, %21 : vector<32x32xf32>
    %cst_9 = arith.constant 0.000000e+00 : f32
    %23 = vector.broadcast %cst_9 : f32 to vector<32x32xf32>
    %24 = arith.maximumf %22, %23 : vector<32x32xf32>
    %c2_i32_10 = arith.constant 2 : i32
    %25 = tpu.dynamic_rotate %24 by %c2_i32_10 dim 0 : vector<32x32xf32>, i32 -> vector<32x32xf32>
    %cst_11 = arith.constant 0.000000e+00 : f32
    %26 = vector.shape_cast %3 : vector<32x1xi1> to vector<32x1xi1>
    %27 = vector.broadcast %26 : vector<32x1xi1> to vector<32x32xi1>
    %28 = vector.broadcast %cst_11 : f32 to vector<32x32xf32>
    %29 = arith.select %27, %25, %28 : vector<32x32xi1>, vector<32x32xf32>
    %c30_i32_12 = arith.constant 30 : i32
    %30 = tpu.dynamic_rotate %24 by %c30_i32_12 dim 0 : vector<32x32xf32>, i32 -> vector<32x32xf32>
    %cst_13 = arith.constant 0.000000e+00 : f32
    %31 = vector.shape_cast %5 : vector<32x1xi1> to vector<32x1xi1>
    %32 = vector.broadcast %31 : vector<32x1xi1> to vector<32x32xi1>
    %33 = vector.broadcast %cst_13 : f32 to vector<32x32xf32>
    %34 = arith.select %32, %30, %33 : vector<32x32xi1>, vector<32x32xf32>
    %35 = tpu.concatenate %29, %24, %34 in 1 : vector<32x32xf32>, vector<32x32xf32>, vector<32x32xf32> -> vector<32x96xf32>
    %36 = arith.truncf %35 : vector<32x96xf32> to vector<32x96xbf16>
    %c0_14 = arith.constant 0 : index
    %c0_15 = arith.constant 0 : index
    %37 = vector.load %arg4[%c0_14, %c0_15] : memref<96x64xbf16, #tpu.memory_space<vmem>>, vector<96x64xbf16>
    %cst_16 = arith.constant dense<0.000000e+00> : vector<32x64xf32>
    %38 = tpu.matmul %36, %37, %cst_16 {dimension_numbers = #tpu.dot_dimension_numbers<[1], [0], [0], [1], [0, 0, 1, 1], [], []>} : vector<32x96xbf16>, vector<96x64xbf16>, vector<32x64xf32> -> vector<32x64xf32>
    %c0_17 = arith.constant 0 : index
    %c0_18 = arith.constant 0 : index
    %39 = vector.load %arg5[%c0_17, %c0_18] : memref<1x64xf32, #tpu.memory_space<vmem>>, vector<1x64xf32>
    %40 = vector.broadcast %39 : vector<1x64xf32> to vector<32x64xf32>
    %41 = arith.addf %38, %40 : vector<32x64xf32>
    %cst_19 = arith.constant 0.000000e+00 : f32
    %42 = vector.broadcast %cst_19 : f32 to vector<32x64xf32>
    %43 = arith.maximumf %41, %42 : vector<32x64xf32>
    %c30_i32_20 = arith.constant 30 : i32
    %44 = tpu.dynamic_rotate %43 by %c30_i32_20 dim 0 : vector<32x64xf32>, i32 -> vector<32x64xf32>
    %45 = arith.maximumf %43, %44 : vector<32x64xf32>
    %46 = arith.truncf %45 : vector<32x64xf32> to vector<32x64xbf16>
    %c0_21 = arith.constant 0 : index
    %c0_22 = arith.constant 0 : index
    %47 = vector.load %arg6[%c0_21, %c0_22] : memref<64x128xbf16, #tpu.memory_space<vmem>>, vector<64x128xbf16>
    %cst_23 = arith.constant dense<0.000000e+00> : vector<32x128xf32>
    %48 = tpu.matmul %46, %47, %cst_23 {dimension_numbers = #tpu.dot_dimension_numbers<[1], [0], [0], [1], [0, 0, 1, 1], [], []>} : vector<32x64xbf16>, vector<64x128xbf16>, vector<32x128xf32> -> vector<32x128xf32>
    %c0_24 = arith.constant 0 : index
    %c0_25 = arith.constant 0 : index
    %49 = vector.load %arg8[%c0_24, %c0_25] : memref<1x128xf32, #tpu.memory_space<vmem>>, vector<1x128xf32>
    %50 = vector.broadcast %49 : vector<1x128xf32> to vector<32x128xf32>
    %51 = arith.addf %48, %50 : vector<32x128xf32>
    %c0_26 = arith.constant 0 : index
    %c0_27 = arith.constant 0 : index
    %52 = vector.load %arg7[%c0_26, %c0_27] : memref<32x128xf32, #tpu.memory_space<vmem>>, vector<32x128xf32>
    %cst_28 = arith.constant 0.000000e+00 : f32
    %53 = vector.broadcast %cst_28 : f32 to vector<2x32xf32>
    %cst_29 = arith.constant 0.000000e+00 : f32
    %54 = vector.broadcast %cst_29 : f32 to vector<2x32xf32>
    %55 = vector.extract_strided_slice %51 {offsets = [0, 0], sizes = [2, 128], strides = [1, 1]} : vector<32x128xf32> to vector<2x128xf32>
    %cst_30 = arith.constant dense<0.000000e+00> : vector<2x128xf32>
    %56 = tpu.matmul %53, %52, %cst_30 {dimension_numbers = #tpu.dot_dimension_numbers<[1], [0], [0], [1], [0, 0, 1, 1], [], []>} : vector<2x32xf32>, vector<32x128xf32>, vector<2x128xf32> -> vector<2x128xf32>
    %57 = arith.addf %55, %56 : vector<2x128xf32>
    %58 = vector.extract_strided_slice %57 {offsets = [0, 0], sizes = [2, 32], strides = [1, 1]} : vector<2x128xf32> to vector<2x32xf32>
    %59 = arith.negf %58 : vector<2x32xf32>
    %60 = math.exp %59 : vector<2x32xf32>
    %cst_31 = arith.constant 1.000000e+00 : f32
    %61 = vector.broadcast %cst_31 : f32 to vector<2x32xf32>
    %62 = arith.addf %61, %60 : vector<2x32xf32>
    %63 = arith.divf %61, %62 : vector<2x32xf32>
    %64 = vector.extract_strided_slice %57 {offsets = [0, 32], sizes = [2, 32], strides = [1, 1]} : vector<2x128xf32> to vector<2x32xf32>
    %65 = arith.negf %64 : vector<2x32xf32>
    %66 = math.exp %65 : vector<2x32xf32>
    %cst_32 = arith.constant 1.000000e+00 : f32
    %67 = vector.broadcast %cst_32 : f32 to vector<2x32xf32>
    %68 = arith.addf %67, %66 : vector<2x32xf32>
    %69 = arith.divf %67, %68 : vector<2x32xf32>
    %70 = vector.extract_strided_slice %57 {offsets = [0, 64], sizes = [2, 32], strides = [1, 1]} : vector<2x128xf32> to vector<2x32xf32>
    %71 = math.tanh %70 : vector<2x32xf32>
    %72 = vector.extract_strided_slice %57 {offsets = [0, 96], sizes = [2, 32], strides = [1, 1]} : vector<2x128xf32> to vector<2x32xf32>
    %73 = arith.negf %72 : vector<2x32xf32>
    %74 = math.exp %73 : vector<2x32xf32>
    %cst_33 = arith.constant 1.000000e+00 : f32
    %75 = vector.broadcast %cst_33 : f32 to vector<2x32xf32>
    %76 = arith.addf %75, %74 : vector<2x32xf32>
    %77 = arith.divf %75, %76 : vector<2x32xf32>
    %78 = arith.mulf %69, %54 : vector<2x32xf32>
    %79 = arith.mulf %63, %71 : vector<2x32xf32>
    %80 = arith.addf %78, %79 : vector<2x32xf32>
    %81 = math.tanh %80 : vector<2x32xf32>
    %82 = arith.mulf %77, %81 : vector<2x32xf32>
    %83 = vector.extract_strided_slice %51 {offsets = [4, 0], sizes = [2, 128], strides = [1, 1]} : vector<32x128xf32> to vector<2x128xf32>
    %cst_34 = arith.constant dense<0.000000e+00> : vector<2x128xf32>
    %84 = tpu.matmul %82, %52, %cst_34 {dimension_numbers = #tpu.dot_dimension_numbers<[1], [0], [0], [1], [0, 0, 1, 1], [], []>} : vector<2x32xf32>, vector<32x128xf32>, vector<2x128xf32> -> vector<2x128xf32>
    %85 = arith.addf %83, %84 : vector<2x128xf32>
    %86 = vector.extract_strided_slice %85 {offsets = [0, 0], sizes = [2, 32], strides = [1, 1]} : vector<2x128xf32> to vector<2x32xf32>
    %87 = arith.negf %86 : vector<2x32xf32>
    %88 = math.exp %87 : vector<2x32xf32>
    %cst_35 = arith.constant 1.000000e+00 : f32
    %89 = vector.broadcast %cst_35 : f32 to vector<2x32xf32>
    %90 = arith.addf %89, %88 : vector<2x32xf32>
    %91 = arith.divf %89, %90 : vector<2x32xf32>
    %92 = vector.extract_strided_slice %85 {offsets = [0, 32], sizes = [2, 32], strides = [1, 1]} : vector<2x128xf32> to vector<2x32xf32>
    %93 = arith.negf %92 : vector<2x32xf32>
    %94 = math.exp %93 : vector<2x32xf32>
    %cst_36 = arith.constant 1.000000e+00 : f32
    %95 = vector.broadcast %cst_36 : f32 to vector<2x32xf32>
    %96 = arith.addf %95, %94 : vector<2x32xf32>
    %97 = arith.divf %95, %96 : vector<2x32xf32>
    %98 = vector.extract_strided_slice %85 {offsets = [0, 64], sizes = [2, 32], strides = [1, 1]} : vector<2x128xf32> to vector<2x32xf32>
    %99 = math.tanh %98 : vector<2x32xf32>
    %100 = vector.extract_strided_slice %85 {offsets = [0, 96], sizes = [2, 32], strides = [1, 1]} : vector<2x128xf32> to vector<2x32xf32>
    %101 = arith.negf %100 : vector<2x32xf32>
    %102 = math.exp %101 : vector<2x32xf32>
    %cst_37 = arith.constant 1.000000e+00 : f32
    %103 = vector.broadcast %cst_37 : f32 to vector<2x32xf32>
    %104 = arith.addf %103, %102 : vector<2x32xf32>
    %105 = arith.divf %103, %104 : vector<2x32xf32>
    %106 = arith.mulf %97, %80 : vector<2x32xf32>
    %107 = arith.mulf %91, %99 : vector<2x32xf32>
    %108 = arith.addf %106, %107 : vector<2x32xf32>
    %109 = math.tanh %108 : vector<2x32xf32>
    %110 = arith.mulf %105, %109 : vector<2x32xf32>
    %111 = vector.extract_strided_slice %51 {offsets = [8, 0], sizes = [2, 128], strides = [1, 1]} : vector<32x128xf32> to vector<2x128xf32>
    %cst_38 = arith.constant dense<0.000000e+00> : vector<2x128xf32>
    %112 = tpu.matmul %110, %52, %cst_38 {dimension_numbers = #tpu.dot_dimension_numbers<[1], [0], [0], [1], [0, 0, 1, 1], [], []>} : vector<2x32xf32>, vector<32x128xf32>, vector<2x128xf32> -> vector<2x128xf32>
    %113 = arith.addf %111, %112 : vector<2x128xf32>
    %114 = vector.extract_strided_slice %113 {offsets = [0, 0], sizes = [2, 32], strides = [1, 1]} : vector<2x128xf32> to vector<2x32xf32>
    %115 = arith.negf %114 : vector<2x32xf32>
    %116 = math.exp %115 : vector<2x32xf32>
    %cst_39 = arith.constant 1.000000e+00 : f32
    %117 = vector.broadcast %cst_39 : f32 to vector<2x32xf32>
    %118 = arith.addf %117, %116 : vector<2x32xf32>
    %119 = arith.divf %117, %118 : vector<2x32xf32>
    %120 = vector.extract_strided_slice %113 {offsets = [0, 32], sizes = [2, 32], strides = [1, 1]} : vector<2x128xf32> to vector<2x32xf32>
    %121 = arith.negf %120 : vector<2x32xf32>
    %122 = math.exp %121 : vector<2x32xf32>
    %cst_40 = arith.constant 1.000000e+00 : f32
    %123 = vector.broadcast %cst_40 : f32 to vector<2x32xf32>
    %124 = arith.addf %123, %122 : vector<2x32xf32>
    %125 = arith.divf %123, %124 : vector<2x32xf32>
    %126 = vector.extract_strided_slice %113 {offsets = [0, 64], sizes = [2, 32], strides = [1, 1]} : vector<2x128xf32> to vector<2x32xf32>
    %127 = math.tanh %126 : vector<2x32xf32>
    %128 = vector.extract_strided_slice %113 {offsets = [0, 96], sizes = [2, 32], strides = [1, 1]} : vector<2x128xf32> to vector<2x32xf32>
    %129 = arith.negf %128 : vector<2x32xf32>
    %130 = math.exp %129 : vector<2x32xf32>
    %cst_41 = arith.constant 1.000000e+00 : f32
    %131 = vector.broadcast %cst_41 : f32 to vector<2x32xf32>
    %132 = arith.addf %131, %130 : vector<2x32xf32>
    %133 = arith.divf %131, %132 : vector<2x32xf32>
    %134 = arith.mulf %125, %108 : vector<2x32xf32>
    %135 = arith.mulf %119, %127 : vector<2x32xf32>
    %136 = arith.addf %134, %135 : vector<2x32xf32>
    %137 = math.tanh %136 : vector<2x32xf32>
    %138 = arith.mulf %133, %137 : vector<2x32xf32>
    %139 = vector.extract_strided_slice %51 {offsets = [12, 0], sizes = [2, 128], strides = [1, 1]} : vector<32x128xf32> to vector<2x128xf32>
    %cst_42 = arith.constant dense<0.000000e+00> : vector<2x128xf32>
    %140 = tpu.matmul %138, %52, %cst_42 {dimension_numbers = #tpu.dot_dimension_numbers<[1], [0], [0], [1], [0, 0, 1, 1], [], []>} : vector<2x32xf32>, vector<32x128xf32>, vector<2x128xf32> -> vector<2x128xf32>
    %141 = arith.addf %139, %140 : vector<2x128xf32>
    %142 = vector.extract_strided_slice %141 {offsets = [0, 0], sizes = [2, 32], strides = [1, 1]} : vector<2x128xf32> to vector<2x32xf32>
    %143 = arith.negf %142 : vector<2x32xf32>
    %144 = math.exp %143 : vector<2x32xf32>
    %cst_43 = arith.constant 1.000000e+00 : f32
    %145 = vector.broadcast %cst_43 : f32 to vector<2x32xf32>
    %146 = arith.addf %145, %144 : vector<2x32xf32>
    %147 = arith.divf %145, %146 : vector<2x32xf32>
    %148 = vector.extract_strided_slice %141 {offsets = [0, 32], sizes = [2, 32], strides = [1, 1]} : vector<2x128xf32> to vector<2x32xf32>
    %149 = arith.negf %148 : vector<2x32xf32>
    %150 = math.exp %149 : vector<2x32xf32>
    %cst_44 = arith.constant 1.000000e+00 : f32
    %151 = vector.broadcast %cst_44 : f32 to vector<2x32xf32>
    %152 = arith.addf %151, %150 : vector<2x32xf32>
    %153 = arith.divf %151, %152 : vector<2x32xf32>
    %154 = vector.extract_strided_slice %141 {offsets = [0, 64], sizes = [2, 32], strides = [1, 1]} : vector<2x128xf32> to vector<2x32xf32>
    %155 = math.tanh %154 : vector<2x32xf32>
    %156 = vector.extract_strided_slice %141 {offsets = [0, 96], sizes = [2, 32], strides = [1, 1]} : vector<2x128xf32> to vector<2x32xf32>
    %157 = arith.negf %156 : vector<2x32xf32>
    %158 = math.exp %157 : vector<2x32xf32>
    %cst_45 = arith.constant 1.000000e+00 : f32
    %159 = vector.broadcast %cst_45 : f32 to vector<2x32xf32>
    %160 = arith.addf %159, %158 : vector<2x32xf32>
    %161 = arith.divf %159, %160 : vector<2x32xf32>
    %162 = arith.mulf %153, %136 : vector<2x32xf32>
    %163 = arith.mulf %147, %155 : vector<2x32xf32>
    %164 = arith.addf %162, %163 : vector<2x32xf32>
    %165 = math.tanh %164 : vector<2x32xf32>
    %166 = arith.mulf %161, %165 : vector<2x32xf32>
    %167 = vector.extract_strided_slice %51 {offsets = [16, 0], sizes = [2, 128], strides = [1, 1]} : vector<32x128xf32> to vector<2x128xf32>
    %cst_46 = arith.constant dense<0.000000e+00> : vector<2x128xf32>
    %168 = tpu.matmul %166, %52, %cst_46 {dimension_numbers = #tpu.dot_dimension_numbers<[1], [0], [0], [1], [0, 0, 1, 1], [], []>} : vector<2x32xf32>, vector<32x128xf32>, vector<2x128xf32> -> vector<2x128xf32>
    %169 = arith.addf %167, %168 : vector<2x128xf32>
    %170 = vector.extract_strided_slice %169 {offsets = [0, 0], sizes = [2, 32], strides = [1, 1]} : vector<2x128xf32> to vector<2x32xf32>
    %171 = arith.negf %170 : vector<2x32xf32>
    %172 = math.exp %171 : vector<2x32xf32>
    %cst_47 = arith.constant 1.000000e+00 : f32
    %173 = vector.broadcast %cst_47 : f32 to vector<2x32xf32>
    %174 = arith.addf %173, %172 : vector<2x32xf32>
    %175 = arith.divf %173, %174 : vector<2x32xf32>
    %176 = vector.extract_strided_slice %169 {offsets = [0, 32], sizes = [2, 32], strides = [1, 1]} : vector<2x128xf32> to vector<2x32xf32>
    %177 = arith.negf %176 : vector<2x32xf32>
    %178 = math.exp %177 : vector<2x32xf32>
    %cst_48 = arith.constant 1.000000e+00 : f32
    %179 = vector.broadcast %cst_48 : f32 to vector<2x32xf32>
    %180 = arith.addf %179, %178 : vector<2x32xf32>
    %181 = arith.divf %179, %180 : vector<2x32xf32>
    %182 = vector.extract_strided_slice %169 {offsets = [0, 64], sizes = [2, 32], strides = [1, 1]} : vector<2x128xf32> to vector<2x32xf32>
    %183 = math.tanh %182 : vector<2x32xf32>
    %184 = vector.extract_strided_slice %169 {offsets = [0, 96], sizes = [2, 32], strides = [1, 1]} : vector<2x128xf32> to vector<2x32xf32>
    %185 = arith.negf %184 : vector<2x32xf32>
    %186 = math.exp %185 : vector<2x32xf32>
    %cst_49 = arith.constant 1.000000e+00 : f32
    %187 = vector.broadcast %cst_49 : f32 to vector<2x32xf32>
    %188 = arith.addf %187, %186 : vector<2x32xf32>
    %189 = arith.divf %187, %188 : vector<2x32xf32>
    %190 = arith.mulf %181, %164 : vector<2x32xf32>
    %191 = arith.mulf %175, %183 : vector<2x32xf32>
    %192 = arith.addf %190, %191 : vector<2x32xf32>
    %193 = math.tanh %192 : vector<2x32xf32>
    %194 = arith.mulf %189, %193 : vector<2x32xf32>
    %195 = vector.extract_strided_slice %51 {offsets = [20, 0], sizes = [2, 128], strides = [1, 1]} : vector<32x128xf32> to vector<2x128xf32>
    %cst_50 = arith.constant dense<0.000000e+00> : vector<2x128xf32>
    %196 = tpu.matmul %194, %52, %cst_50 {dimension_numbers = #tpu.dot_dimension_numbers<[1], [0], [0], [1], [0, 0, 1, 1], [], []>} : vector<2x32xf32>, vector<32x128xf32>, vector<2x128xf32> -> vector<2x128xf32>
    %197 = arith.addf %195, %196 : vector<2x128xf32>
    %198 = vector.extract_strided_slice %197 {offsets = [0, 0], sizes = [2, 32], strides = [1, 1]} : vector<2x128xf32> to vector<2x32xf32>
    %199 = arith.negf %198 : vector<2x32xf32>
    %200 = math.exp %199 : vector<2x32xf32>
    %cst_51 = arith.constant 1.000000e+00 : f32
    %201 = vector.broadcast %cst_51 : f32 to vector<2x32xf32>
    %202 = arith.addf %201, %200 : vector<2x32xf32>
    %203 = arith.divf %201, %202 : vector<2x32xf32>
    %204 = vector.extract_strided_slice %197 {offsets = [0, 32], sizes = [2, 32], strides = [1, 1]} : vector<2x128xf32> to vector<2x32xf32>
    %205 = arith.negf %204 : vector<2x32xf32>
    %206 = math.exp %205 : vector<2x32xf32>
    %cst_52 = arith.constant 1.000000e+00 : f32
    %207 = vector.broadcast %cst_52 : f32 to vector<2x32xf32>
    %208 = arith.addf %207, %206 : vector<2x32xf32>
    %209 = arith.divf %207, %208 : vector<2x32xf32>
    %210 = vector.extract_strided_slice %197 {offsets = [0, 64], sizes = [2, 32], strides = [1, 1]} : vector<2x128xf32> to vector<2x32xf32>
    %211 = math.tanh %210 : vector<2x32xf32>
    %212 = vector.extract_strided_slice %197 {offsets = [0, 96], sizes = [2, 32], strides = [1, 1]} : vector<2x128xf32> to vector<2x32xf32>
    %213 = arith.negf %212 : vector<2x32xf32>
    %214 = math.exp %213 : vector<2x32xf32>
    %cst_53 = arith.constant 1.000000e+00 : f32
    %215 = vector.broadcast %cst_53 : f32 to vector<2x32xf32>
    %216 = arith.addf %215, %214 : vector<2x32xf32>
    %217 = arith.divf %215, %216 : vector<2x32xf32>
    %218 = arith.mulf %209, %192 : vector<2x32xf32>
    %219 = arith.mulf %203, %211 : vector<2x32xf32>
    %220 = arith.addf %218, %219 : vector<2x32xf32>
    %221 = math.tanh %220 : vector<2x32xf32>
    %222 = arith.mulf %217, %221 : vector<2x32xf32>
    %223 = vector.extract_strided_slice %51 {offsets = [24, 0], sizes = [2, 128], strides = [1, 1]} : vector<32x128xf32> to vector<2x128xf32>
    %cst_54 = arith.constant dense<0.000000e+00> : vector<2x128xf32>
    %224 = tpu.matmul %222, %52, %cst_54 {dimension_numbers = #tpu.dot_dimension_numbers<[1], [0], [0], [1], [0, 0, 1, 1], [], []>} : vector<2x32xf32>, vector<32x128xf32>, vector<2x128xf32> -> vector<2x128xf32>
    %225 = arith.addf %223, %224 : vector<2x128xf32>
    %226 = vector.extract_strided_slice %225 {offsets = [0, 0], sizes = [2, 32], strides = [1, 1]} : vector<2x128xf32> to vector<2x32xf32>
    %227 = arith.negf %226 : vector<2x32xf32>
    %228 = math.exp %227 : vector<2x32xf32>
    %cst_55 = arith.constant 1.000000e+00 : f32
    %229 = vector.broadcast %cst_55 : f32 to vector<2x32xf32>
    %230 = arith.addf %229, %228 : vector<2x32xf32>
    %231 = arith.divf %229, %230 : vector<2x32xf32>
    %232 = vector.extract_strided_slice %225 {offsets = [0, 32], sizes = [2, 32], strides = [1, 1]} : vector<2x128xf32> to vector<2x32xf32>
    %233 = arith.negf %232 : vector<2x32xf32>
    %234 = math.exp %233 : vector<2x32xf32>
    %cst_56 = arith.constant 1.000000e+00 : f32
    %235 = vector.broadcast %cst_56 : f32 to vector<2x32xf32>
    %236 = arith.addf %235, %234 : vector<2x32xf32>
    %237 = arith.divf %235, %236 : vector<2x32xf32>
    %238 = vector.extract_strided_slice %225 {offsets = [0, 64], sizes = [2, 32], strides = [1, 1]} : vector<2x128xf32> to vector<2x32xf32>
    %239 = math.tanh %238 : vector<2x32xf32>
    %240 = vector.extract_strided_slice %225 {offsets = [0, 96], sizes = [2, 32], strides = [1, 1]} : vector<2x128xf32> to vector<2x32xf32>
    %241 = arith.negf %240 : vector<2x32xf32>
    %242 = math.exp %241 : vector<2x32xf32>
    %cst_57 = arith.constant 1.000000e+00 : f32
    %243 = vector.broadcast %cst_57 : f32 to vector<2x32xf32>
    %244 = arith.addf %243, %242 : vector<2x32xf32>
    %245 = arith.divf %243, %244 : vector<2x32xf32>
    %246 = arith.mulf %237, %220 : vector<2x32xf32>
    %247 = arith.mulf %231, %239 : vector<2x32xf32>
    %248 = arith.addf %246, %247 : vector<2x32xf32>
    %249 = math.tanh %248 : vector<2x32xf32>
    %250 = arith.mulf %245, %249 : vector<2x32xf32>
    %251 = vector.extract_strided_slice %51 {offsets = [28, 0], sizes = [2, 128], strides = [1, 1]} : vector<32x128xf32> to vector<2x128xf32>
    %cst_58 = arith.constant dense<0.000000e+00> : vector<2x128xf32>
    %252 = tpu.matmul %250, %52, %cst_58 {dimension_numbers = #tpu.dot_dimension_numbers<[1], [0], [0], [1], [0, 0, 1, 1], [], []>} : vector<2x32xf32>, vector<32x128xf32>, vector<2x128xf32> -> vector<2x128xf32>
    %253 = arith.addf %251, %252 : vector<2x128xf32>
    %254 = vector.extract_strided_slice %253 {offsets = [0, 0], sizes = [2, 32], strides = [1, 1]} : vector<2x128xf32> to vector<2x32xf32>
    %255 = arith.negf %254 : vector<2x32xf32>
    %256 = math.exp %255 : vector<2x32xf32>
    %cst_59 = arith.constant 1.000000e+00 : f32
    %257 = vector.broadcast %cst_59 : f32 to vector<2x32xf32>
    %258 = arith.addf %257, %256 : vector<2x32xf32>
    %259 = arith.divf %257, %258 : vector<2x32xf32>
    %260 = vector.extract_strided_slice %253 {offsets = [0, 32], sizes = [2, 32], strides = [1, 1]} : vector<2x128xf32> to vector<2x32xf32>
    %261 = arith.negf %260 : vector<2x32xf32>
    %262 = math.exp %261 : vector<2x32xf32>
    %cst_60 = arith.constant 1.000000e+00 : f32
    %263 = vector.broadcast %cst_60 : f32 to vector<2x32xf32>
    %264 = arith.addf %263, %262 : vector<2x32xf32>
    %265 = arith.divf %263, %264 : vector<2x32xf32>
    %266 = vector.extract_strided_slice %253 {offsets = [0, 64], sizes = [2, 32], strides = [1, 1]} : vector<2x128xf32> to vector<2x32xf32>
    %267 = math.tanh %266 : vector<2x32xf32>
    %268 = vector.extract_strided_slice %253 {offsets = [0, 96], sizes = [2, 32], strides = [1, 1]} : vector<2x128xf32> to vector<2x32xf32>
    %269 = arith.negf %268 : vector<2x32xf32>
    %270 = math.exp %269 : vector<2x32xf32>
    %cst_61 = arith.constant 1.000000e+00 : f32
    %271 = vector.broadcast %cst_61 : f32 to vector<2x32xf32>
    %272 = arith.addf %271, %270 : vector<2x32xf32>
    %273 = arith.divf %271, %272 : vector<2x32xf32>
    %274 = arith.mulf %265, %248 : vector<2x32xf32>
    %275 = arith.mulf %259, %267 : vector<2x32xf32>
    %276 = arith.addf %274, %275 : vector<2x32xf32>
    %277 = math.tanh %276 : vector<2x32xf32>
    %278 = arith.mulf %273, %277 : vector<2x32xf32>
    %c0_62 = arith.constant 0 : index
    %c0_63 = arith.constant 0 : index
    %279 = vector.load %arg9[%c0_62, %c0_63] : memref<32x128xf32, #tpu.memory_space<vmem>>, vector<32x128xf32>
    %cst_64 = arith.constant dense<0.000000e+00> : vector<2x128xf32>
    %280 = tpu.matmul %278, %279, %cst_64 {dimension_numbers = #tpu.dot_dimension_numbers<[1], [0], [0], [1], [0, 0, 1, 1], [], []>} : vector<2x32xf32>, vector<32x128xf32>, vector<2x128xf32> -> vector<2x128xf32>
    %c0_65 = arith.constant 0 : index
    %c0_66 = arith.constant 0 : index
    %281 = vector.load %arg10[%c0_65, %c0_66] : memref<1x128xf32, #tpu.memory_space<vmem>>, vector<1x128xf32>
    %282 = vector.broadcast %281 : vector<1x128xf32> to vector<2x128xf32>
    %283 = arith.addf %280, %282 : vector<2x128xf32>
    %c0_67 = arith.constant 0 : index
    %c0_68 = arith.constant 0 : index
    %284 = vector.load %arg11[%c0_67, %c0_68] : memref<2x128xf32, #tpu.memory_space<vmem>>, vector<2x128xf32>
    tpu.vector_store %arg11[%c0_67, %c0_68], %283 {strides = array<i32>} : memref<2x128xf32, #tpu.memory_space<vmem>>, vector<2x128xf32>,
    return
  }
  func.func @transform_0(%arg0: i32) -> (i32, i32) {
    %c0_i32 = arith.constant 0 : i32
    %c0_i32_0 = arith.constant 0 : i32
    return %arg0, %c0_i32 : i32, i32
  }
  func.func @transform_1(%arg0: i32) -> (i32, i32) {
    %c0_i32 = arith.constant 0 : i32
    %c0_i32_0 = arith.constant 0 : i32
    %c0_i32_1 = arith.constant 0 : i32
    return %c0_i32, %c0_i32_0 : i32, i32
  }
  func.func @transform_2(%arg0: i32) -> (i32, i32) {
    %c0_i32 = arith.constant 0 : i32
    %c0_i32_0 = arith.constant 0 : i32
    %c0_i32_1 = arith.constant 0 : i32
    return %c0_i32, %c0_i32_0 : i32, i32
  }
  func.func @transform_3(%arg0: i32) -> (i32, i32) {
    %c0_i32 = arith.constant 0 : i32
    %c0_i32_0 = arith.constant 0 : i32
    %c0_i32_1 = arith.constant 0 : i32
    return %c0_i32, %c0_i32_0 : i32, i32
  }
  func.func @transform_4(%arg0: i32) -> (i32, i32) {
    %c0_i32 = arith.constant 0 : i32
    %c0_i32_0 = arith.constant 0 : i32
    %c0_i32_1 = arith.constant 0 : i32
    return %c0_i32, %c0_i32_0 : i32, i32
  }
  func.func @transform_5(%arg0: i32) -> (i32, i32) {
    %c0_i32 = arith.constant 0 : i32
    %c0_i32_0 = arith.constant 0 : i32
    %c0_i32_1 = arith.constant 0 : i32
    return %c0_i32, %c0_i32_0 : i32, i32
  }
  func.func @transform_6(%arg0: i32) -> (i32, i32) {
    %c0_i32 = arith.constant 0 : i32
    %c0_i32_0 = arith.constant 0 : i32
    %c0_i32_1 = arith.constant 0 : i32
    return %c0_i32, %c0_i32_0 : i32, i32
  }
  func.func @transform_7(%arg0: i32) -> (i32, i32) {
    %c0_i32 = arith.constant 0 : i32
    %c0_i32_0 = arith.constant 0 : i32
    %c0_i32_1 = arith.constant 0 : i32
    return %c0_i32, %c0_i32_0 : i32, i32
  }
  func.func @transform_8(%arg0: i32) -> (i32, i32) {
    %c0_i32 = arith.constant 0 : i32
    %c0_i32_0 = arith.constant 0 : i32
    %c0_i32_1 = arith.constant 0 : i32
    return %c0_i32, %c0_i32_0 : i32, i32
  }
  func.func @transform_9(%arg0: i32) -> (i32, i32) {
    %c0_i32 = arith.constant 0 : i32
    %c0_i32_0 = arith.constant 0 : i32
    %c0_i32_1 = arith.constant 0 : i32
    return %c0_i32, %c0_i32_0 : i32, i32
  }
  func.func @transform_10(%arg0: i32) -> (i32, i32) {
    %c0_i32 = arith.constant 0 : i32
    %c0_i32_0 = arith.constant 0 : i32
    return %arg0, %c0_i32 : i32, i32
  }
}

</mosaic_0001>

<bundles_post_ra>
// kernel: tpu_custom_call.1
= control target key start
LH: loop header
LB: loop body
LE: loop exit
PB: predicated region body
PF: predicated region fallthrough
CT: control target
= control target key end

     0   :  { %v41_v3 = vlaneseq  ;;  %s1225_s21 = smov 8   ;;  %s1530_s0 = inlined_call_operand.vmem [shape: f32[32,8], index: 0, kind: input, shape index: {}]   ;;  %s1531_s1 = inlined_call_operand.vmem [shape: bf16[24,32], index: 1, kind: input, shape index: {}]   ;;  %s1532_s2 = inlined_call_operand.vmem [shape: f32[1,32], index: 2, kind: input, shape index: {}]   ;;  %s1533_s3 = inlined_call_operand.vmem [shape: bf16[96,64], index: 3, kind: input, shape index: {}]   ;;  %s1534_s4 = inlined_call_operand.vmem [shape: f32[1,64], index: 4, kind: input, shape index: {}]   ;;  %s1535_s5 = inlined_call_operand.vmem [shape: bf16[64,128], index: 5, kind: input, shape index: {}]   ;;  %s1536_s6 = inlined_call_operand.vmem [shape: f32[32,128], index: 6, kind: input, shape index: {}]   ;;  %s1537_s7 = inlined_call_operand.vmem [shape: f32[1,128], index: 7, kind: input, shape index: {}]   ;;  %s1538_s8 = inlined_call_operand.vmem [shape: f32[32,128], index: 8, kind: input, shape index: {}]   ;;  %s1539_s9 = inlined_call_operand.vmem [shape: f32[1,128], index: 9, kind: input, shape index: {}]   ;;  %s1540_s10 = inlined_call_operand.hbm [shape: f32[2,128], index: 10, kind: output, shape index: {}]  }
   0x1   :  { %v37_v0 = vld [vmem:[%s1530_s0] sm:$0xff]  ;;  %v38_v1 = vld [vmem:[%s1530_s0 + $0x8] sm:$0xff]  ;;  %v39_v2 = vld [vmem:[%s1530_s0 + $0x10] sm:$0xff] }
   0x2   :  { %v76_v4 = vrot.slane %v38_v1, 2  ;;  %v1091_v5 = vpack.i.bf16 %v38_v1, %v37_v0  ;;  %v40_v6 = vld [vmem:[%s1530_s0 + $0x18] sm:$0xff]  ;;  %v75_v7 = vrot.slane %v37_v0, 2  ;;  %v1298_v8 = vshrl.u32 %v41_v3, 7 }
   0x3   :  { %v77_v9 = vrot.slane %v39_v2, 2  ;;  %v78_v10 = vrot.slane %v40_v6, 2  ;;  %v1101_v11 = vpack.i.bf16 %v40_v6, %v39_v2 }
   0x4   :  { %1092 = vrot.lane.b32.xlu0 %v1091_v5, %s1225_s21  ;;  %vm79_vm0 = vcmp.lt.s32.totalorder %v1298_v8, 6  ;;  %v1302_v12 = vadd.s32 24, %v1298_v8 }
   0x5   :  { %15 = vsyncpa [#allocation3], 0  ;;  %v81_v13 = vsel %vm79_vm0, %v76_v4, %v77_v9  ;;  %v82_v14 = vsel %vm79_vm0, %v75_v7, %v76_v4  ;;  %1102 = vrot.lane.b32.xlu1 %v1101_v11, %s1225_s21  ;;  %v83_v15 = vsel %vm79_vm0, %v78_v10, %v75_v7  ;;  %v80_v16 = vsel %vm79_vm0, %v77_v9, %v78_v10  ;;  %s1226_s0 = smov 16   ;;  %v142_v25 = vld [vmem:[%s1531_s1 + $0x8] sm:$0xf]  ;;  %v1074_v29 = vld [vmem:[%s1531_s1] sm:$0xff] }
   0x6   :  { %vm53_vm1 = vcmp.lt.s32.totalorder %v1302_v12, 30  ;;  %v1096_v17 = vpack.i.bf16 %v81_v13, %v82_v14  ;;  %v55_v20 = vrot.slane %v38_v1, 6  ;;  %v54_v21 = vrot.slane %v37_v0, 6  ;;  %v1131_v57 = vld [vmem:[%s1532_s2] ss:$0 sm:$0xff]  ;;  %v1080_v58 = vld [vmem:[%s1533_s3 + $0x28] sm:$0xff] }
   0x7   :  { %v95_v18 = vsel %vm53_vm1, %v83_v15, 0.0  ;;  %v57_v22 = vrot.slane %v40_v6, 6  ;;  %vm58_vm2 = vcmp.lt.s32.totalorder %v1298_v8, 2  ;;  %v152_v26 = vunpack.c.l.b16 %v142_v25  ;;  %319 = vmatpush.bf16.msra.mxu1 %v1080_v58  ;;  %v1079_v60 = vld [vmem:[%s1533_s3 + $0x20] sm:$0xff]  ;;  %s1227_s11 = smov 32   ;;  %s1228_s2 = smov 64  }
   0x8   :  { %v1106_v19 = vpack.i.bf16 %v95_v18, %v80_v16  ;;  %v61_v23 = vsel %vm58_vm2, %v54_v21, %v55_v20  ;;  %vm163_vm3 = vcmask 1043456   ;;  %v56_v32 = vrot.slane %v39_v2, 6  ;;  %v1075_v12 = vld [vmem:[%s1533_s3] sm:$0xff]  ;;  %v1082_v58 = vld [vmem:[%s1535_s5 + $0x8] sm:$0xff] }
   0x9   :  { %v62_v24 = vsel %vm58_vm2, %v57_v22, %v54_v21  ;;  %v154_v27 = vpack.c.b16 %v152_v26, %v152_v26  ;;  %vm46_vm4 = vcmp.ge.s32.totalorder %v1298_v8, 2  ;;  %vm128_vm5 = vcmask 64512  }
   0xa   :  { %v71_v37 = vsel %vm46_vm4, %v62_v24, 0.0  ;;  %v59_v38 = vsel %vm58_vm2, %v56_v32, %v57_v22  ;;  %v60_v39 = vsel %vm58_vm2, %v55_v20, %v56_v32  ;;  %vm133_vm6 = vcmask 130048   ;;  %v1076_v32 = vld [vmem:[%s1533_s3 + $0x8] sm:$0xff] }
   0xb   :  { %v165_v28 = vsel %vm163_vm3, %v154_v27, 0  ;;  %vm156_vm7 = vcmask 195584   ;;  %320 = vmatpush.bf16.msra.mxu1 %v1079_v60  ;;  %vm246_vm8 = vcmask 261120   ;;  %vm251_vm9 = vcmask 523264   ;;  %v1081_v60 = vld [vmem:[%s1535_s5] sm:$0xff] }
   0xc   :  { %1097 = vrot.lane.b32.xlu0 %v1096_v17, %s1226_s0  ;;  %173 = vmatpush.bf16.msra.mxu0 %v165_v28  ;;  %vm310_vm10 = vcmask 785408  }
   0xd   :  { %1107 = vrot.lane.b32.xlu1 %v1106_v19, %s1226_s0  ;;  %s1230_s0 = smov [#allocation2]  }
   0xe   :  { %s997_s22 = sshll.u32 %s1230_s0, 4  ;;  %s998_s22 = int_to_ptr.vmem [resolvable:$true] %s997_s22 }
  0x10   :  { %174 = vmatpush.bf16.msra.mxu0 %v1074_v29 }
  0x76   :  { %v1093_v30 = vpop.permute.xlu0 %1092 }
  0x77   :  { %v1103_v31 = vpop.permute.xlu1 %1102  ;;  %v1095_v33 = vunpack.i.h.bf16 %v1093_v30  ;;  %v1094_v34 = vunpack.i.l.bf16 %v1093_v30  ;;  %v1078_v30 = vld [vmem:[%s1533_s3 + $0x18] sm:$0xff] }
  0x78   :  { %v1105_v35 = vunpack.i.h.bf16 %v1103_v31  ;;  %v1104_v36 = vunpack.i.l.bf16 %v1103_v31  ;;  %321 = vmatpush.bf16.msra.mxu1 %v1078_v30  ;;  %v1077_v31 = vld [vmem:[%s1533_s3 + $0x10] sm:$0xff]  ;;  %v1458_v30 = vld [vmem:[%s1537_s7] ss:$0 sm:$0xff] }
  0x79   :  { %v129_v43 = vsel %vm128_vm5, %v71_v37, %v1094_v34  ;;  %v130_v44 = vsel %vm128_vm5, %v61_v23, %v1095_v33 }
  0x7a   :  { %v131_v45 = vsel %vm128_vm5, %v60_v39, %v1104_v36  ;;  %v132_v46 = vsel %vm128_vm5, %v59_v38, %v1105_v35 }
  0x7c   :  { %322 = vmatpush.bf16.msra.mxu1 %v1077_v31 }
  0x7e   :  { %v1098_v40 = vpop.permute.xlu0 %1097 }
  0x7f   :  { %v1100_v41 = vunpack.i.h.bf16 %v1098_v40  ;;  %v1099_v42 = vunpack.i.l.bf16 %v1098_v40  ;;  %v1108_v47 = vpop.permute.xlu1 %1107 }
  0x80   :  { %v1110_v50 = vunpack.i.h.bf16 %v1108_v47  ;;  %v1109_v51 = vunpack.i.l.bf16 %v1108_v47  ;;  %323 = vmatpush.bf16.msra.mxu1 %v1076_v32 }
  0x81   :  { %v134_v48 = vsel %vm133_vm6, %v129_v43, %v1099_v42  ;;  %v135_v49 = vsel %vm133_vm6, %v130_v44, %v1100_v41 }
  0x82   :  { %v138_v52 = vpack.c.bf16 %v135_v49, %v134_v48  ;;  %v136_v53 = vsel %vm133_vm6, %v131_v45, %v1109_v51  ;;  %v137_v54 = vsel %vm133_vm6, %v132_v46, %v1110_v50 }
  0x83   :  { %v139_v55 = vpack.c.bf16 %v137_v54, %v136_v53 }
  0x84   :  { %1012 = vmatmul.msk.bf16.vlgmr.msra.gmra.mxu0 %vm156_vm7, %v138_v52  ;;  %324 = vmatpush.bf16.msra.mxu1 %v1075_v12 }
  0x94   :  { %1013 = vmatmul.msk.bf16.gmra.mxu0 %vm156_vm7, %v139_v55 }
 0x101   :  { %v176_v56 = vpop.f32.mrf.mxu0 }
 0x102   :  { %v177_v59 = vadd.f32 %v1131_v57, %v176_v56  ;;  %v1084_v56 = vld [vmem:[%s1535_s5 + $0x18] sm:$0xff] }
 0x103   :  { %400 = vmatpush.bf16.msra.mxu2 %v1084_v56 }
 0x104   :  { %v186_v62 = vmax.f32 %v177_v59, 0.0  ;;  %v1398_v59 = vld [vmem:[%s1536_s6 + $0x18] sm:$0xff] }
 0x105   :  { %434 = vmatpush.msra.mxu3 %v1398_v59  ;;  %703 = vmatpush.msrb.mxu0 %v1398_v59 }
 0x106   :  { %v190_v1 = vrot.slane %v186_v62, 6  ;;  %v202_v10 = vrot.slane %v186_v62, 2 }
 0x109   :  { %v178_v61 = vpop.f32.mrf.mxu0 }
 0x10a   :  { %v179_v63 = vadd.f32 %v1131_v57, %v178_v61  ;;  %v1408_v61 = vld [vmem:[%s1536_s6 + $0x10] sm:$0xff] }
 0x10b   :  { %435 = vmatpush.msra.mxu3 %v1408_v61  ;;  %704 = vmatpush.msrb.mxu0 %v1408_v61 }
 0x10c   :  { %v187_v0 = vmax.f32 %v179_v63, 0.0 }
 0x10e   :  { %v191_v2 = vrot.slane %v187_v0, 6  ;;  %v1111_v3 = vpack.i.bf16 %v187_v0, %v186_v62  ;;  %v203_v7 = vrot.slane %v187_v0, 2  ;;  %v1414_v62 = vld [vmem:[%s1536_s6 + $0x8] sm:$0xff]  ;;  %v1422_v0 = vld [vmem:[%s1536_s6] sm:$0xff] }
 0x10f   :  { %436 = vmatpush.msra.mxu3 %v1414_v62  ;;  %705 = vmatpush.msrb.mxu0 %v1414_v62 }
 0x110   :  { %1112 = vrot.lane.b32.xlu2 %v1111_v3, %s1227_s11  ;;  %v196_v4 = vsel %vm58_vm2, %v190_v1, %v191_v2  ;;  %v208_v15 = vsel %vm79_vm0, %v202_v10, %v203_v7  ;;  %v1132_v3 = vld [vmem:[%s1534_s4] ss:$0 sm:$0xff] }
 0x111   :  { %v181_v5 = vpop.f32.mrf.mxu0  ;;  %437 = vmatpush.msra.mxu3 %v1422_v0  ;;  %706 = vmatpush.msrb.mxu0 %v1422_v0 }
 0x112   :  { %v182_v6 = vadd.f32 %v1131_v57, %v181_v5 }
 0x113   :  { %497 = vmatpush.msrb.mxu3 %v1398_v59  ;;  %839 = vmatpush.msra.mxu0 %v1398_v59 }
 0x114   :  { %v188_v9 = vmax.f32 %v182_v6, 0.0 }
 0x115   :  { %498 = vmatpush.msrb.mxu3 %v1408_v61  ;;  %840 = vmatpush.msra.mxu0 %v1408_v61 }
 0x116   :  { %v192_v11 = vrot.slane %v188_v9, 6  ;;  %v204_v13 = vrot.slane %v188_v9, 2 }
 0x117   :  { %499 = vmatpush.msrb.mxu3 %v1414_v62  ;;  %841 = vmatpush.msra.mxu0 %v1414_v62 }
 0x118   :  { %v207_v14 = vsel %vm79_vm0, %v203_v7, %v204_v13  ;;  %v195_v16 = vsel %vm58_vm2, %v191_v2, %v192_v11 }
 0x119   :  { %v183_v17 = vpop.f32.mrf.mxu0  ;;  %v1116_v18 = vpack.i.bf16 %v207_v14, %v208_v15  ;;  %500 = vmatpush.msrb.mxu3 %v1422_v0  ;;  %842 = vmatpush.msra.mxu0 %v1422_v0 }
 0x11a   :  { %v184_v19 = vadd.f32 %v1131_v57, %v183_v17  ;;  %v1083_v57 = vld [vmem:[%s1535_s5 + $0x10] sm:$0xff] }
 0x11b   :  { %1117 = vrot.lane.b32.xlu2 %v1116_v18, %s1228_s2  ;;  %401 = vmatpush.bf16.msra.mxu2 %v1083_v57 }
 0x11c   :  { %v189_v20 = vmax.f32 %v184_v19, 0.0 }
 0x11e   :  { %v193_v21 = vrot.slane %v189_v20, 6  ;;  %v205_v22 = vrot.slane %v189_v20, 2  ;;  %v1121_v23 = vpack.i.bf16 %v189_v20, %v188_v9 }
 0x11f   :  { %402 = vmatpush.bf16.msra.mxu2 %v1082_v58 }
 0x120   :  { %1122 = vrot.lane.b32.xlu0 %v1121_v23, %s1227_s11  ;;  %v206_v24 = vsel %vm79_vm0, %v204_v13, %v205_v22  ;;  %v209_v25 = vsel %vm79_vm0, %v205_v22, %v202_v10  ;;  %v197_v26 = vsel %vm58_vm2, %v193_v21, %v190_v1  ;;  %v194_v27 = vsel %vm58_vm2, %v192_v11, %v193_v21 }
 0x121   :  { %v213_v28 = vsel %vm53_vm1, %v209_v25, 0.0  ;;  %v198_v37 = vsel %vm46_vm4, %v197_v26, 0.0  ;;  %v1229_v1 = vmov 0.0  }
 0x122   :  { %v1126_v29 = vpack.i.bf16 %v213_v28, %v206_v24  ;;  %438 = vmatmul.f32.vlgmr.msra.gmra.mxu3 %v1229_v1 }
 0x123   :  { %403 = vmatpush.bf16.msra.mxu2 %v1081_v60  ;;  %567 = vmatpush.msra.mxu3 %v1398_v59 }
 0x124   :  { %1127 = vrot.lane.b32.xlu1 %v1126_v29, %s1228_s2 }
 0x125   :  { %568 = vmatpush.msra.mxu3 %v1408_v61 }
 0x127   :  { %905 = vmatpush.msrb.mxu2 %v1398_v59  ;;  %569 = vmatpush.msra.mxu3 %v1414_v62 }
 0x129   :  { %906 = vmatpush.msrb.mxu2 %v1408_v61  ;;  %570 = vmatpush.msra.mxu3 %v1422_v0 }
 0x12b   :  { %907 = vmatpush.msrb.mxu2 %v1414_v62 }
 0x12d   :  { %908 = vmatpush.msrb.mxu2 %v1422_v0 }
 0x16a   :  { %v1113_v33 = vpop.permute.xlu2 %1112 }
 0x16b   :  { %v1115_v34 = vunpack.i.h.bf16 %v1113_v33  ;;  %v1114_v35 = vunpack.i.l.bf16 %v1113_v33 }
 0x16d   :  { %v247_v40 = vsel %vm246_vm8, %v198_v37, %v1114_v35  ;;  %v248_v41 = vsel %vm246_vm8, %v196_v4, %v1115_v34 }
 0x175   :  { %v1118_v36 = vpop.permute.xlu2 %1117 }
 0x176   :  { %v1120_v38 = vunpack.i.h.bf16 %v1118_v36  ;;  %v1119_v39 = vunpack.i.l.bf16 %v1118_v36 }
 0x178   :  { %v252_v42 = vsel %vm251_vm9, %v247_v40, %v1119_v39  ;;  %v253_v43 = vsel %vm251_vm9, %v248_v41, %v1120_v38 }
 0x179   :  { %v256_v44 = vpack.c.bf16 %v253_v43, %v252_v42 }
 0x17b   :  { %1038 = vmatmul.msk.bf16.vlgmr.msra.gmra.mxu1 %vm310_vm10, %v256_v44 }
 0x192   :  { %v1123_v45 = vpop.permute.xlu0 %1122 }
 0x193   :  { %v1125_v46 = vunpack.i.h.bf16 %v1123_v45  ;;  %v1124_v47 = vunpack.i.l.bf16 %v1123_v45 }
 0x195   :  { %v249_v51 = vsel %vm246_vm8, %v195_v16, %v1124_v47  ;;  %v250_v52 = vsel %vm246_vm8, %v194_v27, %v1125_v46 }
 0x196   :  { %v1128_v48 = vpop.permute.xlu1 %1127 }
 0x197   :  { %v1130_v49 = vunpack.i.h.bf16 %v1128_v48  ;;  %v1129_v50 = vunpack.i.l.bf16 %v1128_v48 }
 0x199   :  { %v254_v53 = vsel %vm251_vm9, %v249_v51, %v1129_v50  ;;  %v255_v54 = vsel %vm251_vm9, %v250_v52, %v1130_v49 }
 0x19a   :  { %v257_v55 = vpack.c.bf16 %v255_v54, %v254_v53 }
 0x19c   :  { %1039 = vmatmul.msk.bf16.gmra.mxu1 %vm310_vm10, %v257_v55 }
 0x1a5   :  { %v439_v32 = vpop.f32.mrf.mxu3 }
 0x1f8   :  { %v326_v63 = vpop.f32.mrf.mxu1 }
 0x1f9   :  { %v327_v5 = vadd.f32 %v1132_v3, %v326_v63 }
 0x1fb   :  { %v336_v7 = vmax.f32 %v327_v5, 0.0 }
 0x1fd   :  { %v340_v13 = vrot.slane %v336_v7, 2 }
 0x200   :  { %v328_v2 = vpop.f32.mrf.mxu1 }
 0x201   :  { %v329_v4 = vadd.f32 %v1132_v3, %v328_v2 }
 0x203   :  { %v337_v6 = vmax.f32 %v329_v4, 0.0 }
 0x205   :  { %v341_v10 = vrot.slane %v337_v6, 2 }
 0x207   :  { %v346_v16 = vsel %vm79_vm0, %v340_v13, %v341_v10 }
 0x208   :  { %v348_v19 = vmax.f32 %v336_v7, %v346_v16 }
 0x219   :  { %v331_v9 = vpop.f32.mrf.mxu1 }
 0x21a   :  { %v332_v11 = vadd.f32 %v1132_v3, %v331_v9 }
 0x21c   :  { %v338_v14 = vmax.f32 %v332_v11, 0.0 }
 0x21e   :  { %v342_v15 = vrot.slane %v338_v14, 2 }
 0x220   :  { %v345_v17 = vsel %vm79_vm0, %v341_v10, %v342_v15 }
 0x221   :  { %v333_v18 = vpop.f32.mrf.mxu1  ;;  %v349_v20 = vmax.f32 %v337_v6, %v345_v17 }
 0x222   :  { %v334_v21 = vadd.f32 %v1132_v3, %v333_v18 }
 0x223   :  { %v352_v22 = vpack.c.bf16 %v349_v20, %v348_v19 }
 0x224   :  { %v339_v23 = vmax.f32 %v334_v21, 0.0 }
 0x225   :  { %1056 = vmatmul.msk.bf16.vlgmr.msra.gmra.mxu2 %vm251_vm9, %v352_v22 }
 0x226   :  { %v343_v24 = vrot.slane %v339_v23, 2 }
 0x228   :  { %v347_v25 = vsel %vm79_vm0, %v343_v24, %v340_v13  ;;  %v344_v26 = vsel %vm79_vm0, %v342_v15, %v343_v24 }
 0x229   :  { %v351_v27 = vmax.f32 %v339_v23, %v347_v25  ;;  %v350_v28 = vmax.f32 %v338_v14, %v344_v26 }
 0x22b   :  { %v353_v29 = vpack.c.bf16 %v351_v27, %v350_v28 }
 0x235   :  { %1057 = vmatmul.msk.bf16.gmra.mxu2 %vm251_vm9, %v353_v29 }
 0x2a8   :  { %v405_v31 = vpop.f32.mrf.mxu2 }
 0x2a9   :  { %v406_v12 = vadd.f32 %v1458_v30, %v405_v31 }
 0x2ab   :  { %v442_v33 = vadd.f32 %v439_v32, %v406_v12 }
 0x2ad   :  { %1135 = vtanh.f32 %v442_v33  ;;  %v1058_v8 = vmul.f32 -1.442695, %v442_v33 }
 0x2af   :  { %1137 = vpow2.f32 %v1058_v8 }
 0x2b0   :  { %v407_v26 = vpop.f32.mrf.mxu2 }
 0x2b1   :  { %v408_v27 = vadd.f32 %v1458_v30, %v407_v26 }
 0x2b3   :  { %v1136_v34 = vpop.eup %1135 }
 0x2b4   :  { %465 = vrot.lane.b32.xlu2 %v1136_v34, %s1228_s2 }
 0x2b5   :  { %v1138_v35 = vpop.eup %1137 }
 0x2b6   :  { %v446_v36 = vadd.f32 1.0, %v1138_v35 }
 0x2b8   :  { %1139 = vrcp.f32 %v446_v36  ;;  %v458_v42 = vand.u32 2147483648, %v446_v36  ;;  %vm452_vm12 = vweird.f32 %v446_v36  ;;  %v456_v43 = vand.u32 2147483647, %v446_v36 }
 0x2ba   :  { %v459_v45 = vor.u32 1.1754944e-38, %v458_v42  ;;  %vm457_vm14 = vcmp.eq.f32.partialorder %v456_v43, 8.507059e+37 }
 0x2be   :  { %v1140_v37 = vpop.eup %1139 }
 0x2bf   :  { %v448_v38 = vmul.f32 %v1140_v37, %v446_v36  ;;  %vm453_vm11 = vweird.f32 %v1140_v37 }
 0x2c0   :  { %vm454_vm13 = vmor %vm452_vm12, %vm453_vm11 }
 0x2c1   :  { %v449_v39 = vsub.f32 1.0, %v448_v38 }
 0x2c3   :  { %v450_v40 = vmul.f32 %v1140_v37, %v449_v39 }
 0x2c5   :  { %v451_v41 = vadd.f32 %v1140_v37, %v450_v40 }
 0x2c7   :  { %v455_v44 = vsel %vm454_vm13, %v1140_v37, %v451_v41 }
 0x2c8   :  { %v460_v47 = vsel %vm457_vm14, %v459_v45, %v455_v44 }
 0x2c9   :  { %v463_v49 = vmul.f32 0.0, %v460_v47 }
 0x30e   :  { %v466_v46 = vpop.permute.xlu2 %465 }
 0x30f   :  { %v468_v48 = vmul.f32 %v466_v46, %v460_v47 }
 0x311   :  { %470 = vrot.lane.b32.xlu0 %v468_v48, %s1227_s11 }
 0x383   :  { %v471_v50 = vpop.permute.xlu0 %470 }
 0x384   :  { %v473_v51 = vadd.f32 %v471_v50, %v463_v49 }
 0x386   :  { %1141 = vtanh.f32 %v473_v51  ;;  %v530_v17 = vrot.slane %v473_v51, 4 }
 0x38c   :  { %v1142_v52 = vpop.eup %1141 }
 0x38d   :  { %476 = vrot.lane.b32.xlu1 %v1142_v52, %s1228_s2 }
 0x3ff   :  { %v477_v53 = vpop.permute.xlu1 %476 }
 0x400   :  { %v479_v54 = vmul.f32 %v477_v53, %v460_v47 }
 0x402   :  { %481 = vrot.lane.b32.xlu2 %v479_v54, %s1227_s11 }
 0x45c   :  { %v482_v55 = vpop.permute.xlu2 %481 }
 0x45d   :  { %1059 = vmatmul.msk.f32.vlgmr.msrb.gmra.mxu3 %vm246_vm8, %v482_v55 }
 0x45e   :  { %633 = vmatpush.msrb.mxu3 %v1398_v59 }
 0x460   :  { %634 = vmatpush.msrb.mxu3 %v1408_v61 }
 0x462   :  { %635 = vmatpush.msrb.mxu3 %v1414_v62 }
 0x464   :  { %636 = vmatpush.msrb.mxu3 %v1422_v0 }
 0x4e0   :  { %v502_v56 = vpop.f32.mrf.mxu3 }
 0x4e1   :  { %v506_v57 = vrot.slane %v502_v56, 4 }
 0x4e3   :  { %v508_v58 = vadd.f32 %v506_v57, %v406_v12 }
 0x4e5   :  { %1143 = vtanh.f32 %v508_v58  ;;  %v1060_v63 = vmul.f32 -1.442695, %v508_v58 }
 0x4e7   :  { %1145 = vpow2.f32 %v1060_v63 }
 0x4eb   :  { %v1144_v60 = vpop.eup %1143 }
 0x4ec   :  { %534 = vrot.lane.b32.xlu0 %v1144_v60, %s1228_s2 }
 0x4ed   :  { %v1146_v1 = vpop.eup %1145 }
 0x4ee   :  { %v512_v2 = vadd.f32 1.0, %v1146_v1 }
 0x4f0   :  { %1147 = vrcp.f32 %v512_v2  ;;  %v524_v9 = vand.u32 2147483648, %v512_v2  ;;  %vm518_vm0 = vweird.f32 %v512_v2  ;;  %v522_v10 = vand.u32 2147483647, %v512_v2 }
 0x4f2   :  { %v525_v13 = vor.u32 1.1754944e-38, %v524_v9  ;;  %vm523_vm2 = vcmp.eq.f32.partialorder %v522_v10, 8.507059e+37 }
 0x4f6   :  { %v1148_v3 = vpop.eup %1147 }
 0x4f7   :  { %v514_v4 = vmul.f32 %v1148_v3, %v512_v2  ;;  %vm519_vm15 = vweird.f32 %v1148_v3 }
 0x4f8   :  { %vm520_vm1 = vmor %vm518_vm0, %vm519_vm15 }
 0x4f9   :  { %v515_v5 = vsub.f32 1.0, %v514_v4 }
 0x4fb   :  { %v516_v6 = vmul.f32 %v1148_v3, %v515_v5 }
 0x4fd   :  { %v517_v7 = vadd.f32 %v1148_v3, %v516_v6 }
 0x4ff   :  { %v521_v11 = vsel %vm520_vm1, %v1148_v3, %v517_v7 }
 0x500   :  { %v526_v15 = vsel %vm523_vm2, %v525_v13, %v521_v11 }
 0x501   :  { %v532_v18 = vmul.f32 %v530_v17, %v526_v15 }
 0x55e   :  { %v535_v14 = vpop.permute.xlu0 %534 }
 0x55f   :  { %v537_v16 = vmul.f32 %v535_v14, %v526_v15 }
 0x561   :  { %539 = vrot.lane.b32.xlu1 %v537_v16, %s1227_s11 }
 0x5d3   :  { %v540_v19 = vpop.permute.xlu1 %539 }
 0x5d4   :  { %v542_v20 = vadd.f32 %v540_v19, %v532_v18  ;;  %v410_v19 = vpop.f32.mrf.mxu2 }
 0x5d6   :  { %1149 = vtanh.f32 %v542_v20  ;;  %v597_v41 = vrot.slane %v542_v20, 4  ;;  %v411_v20 = vadd.f32 %v1458_v30, %v410_v19 }
 0x5dc   :  { %v1150_v21 = vpop.eup %1149 }
 0x5dd   :  { %545 = vrot.lane.b32.xlu2 %v1150_v21, %s1228_s2 }
 0x637   :  { %v546_v22 = vpop.permute.xlu2 %545 }
 0x638   :  { %v548_v23 = vmul.f32 %v546_v22, %v526_v15 }
 0x63a   :  { %v550_v24 = vrot.slane %v548_v23, 4 }
 0x63c   :  { %551 = vrot.lane.b32.xlu0 %v550_v24, %s1227_s11 }
 0x6ae   :  { %v552_v25 = vpop.permute.xlu0 %551 }
 0x6af   :  { %1061 = vmatmul.msk.f32.vlgmr.msra.gmra.mxu3 %vm246_vm8, %v552_v25 }
 0x6b0   :  { %769 = vmatpush.msra.mxu3 %v1398_v59 }
 0x6b2   :  { %770 = vmatpush.msra.mxu3 %v1408_v61 }
 0x6b4   :  { %771 = vmatpush.msra.mxu3 %v1414_v62 }
 0x6b6   :  { %772 = vmatpush.msra.mxu3 %v1422_v0 }
 0x732   :  { %v572_v28 = vpop.f32.mrf.mxu3 }
 0x733   :  { %v575_v29 = vadd.f32 %v572_v28, %v408_v27 }
 0x735   :  { %1151 = vtanh.f32 %v575_v29  ;;  %v1062_v32 = vmul.f32 -1.442695, %v575_v29 }
 0x737   :  { %1153 = vpow2.f32 %v1062_v32 }
 0x73b   :  { %v1152_v31 = vpop.eup %1151 }
 0x73c   :  { %601 = vrot.lane.b32.xlu1 %v1152_v31, %s1228_s2 }
 0x73d   :  { %v1154_v12 = vpop.eup %1153 }
 0x73e   :  { %v579_v33 = vadd.f32 1.0, %v1154_v12 }
 0x740   :  { %1155 = vrcp.f32 %v579_v33  ;;  %v591_v0 = vand.u32 2147483648, %v579_v33  ;;  %vm585_vm4 = vweird.f32 %v579_v33  ;;  %v589_v35 = vand.u32 2147483647, %v579_v33 }
 0x742   :  { %v592_v37 = vor.u32 1.1754944e-38, %v591_v0  ;;  %vm590_vm6 = vcmp.eq.f32.partialorder %v589_v35, 8.507059e+37 }
 0x746   :  { %v1156_v59 = vpop.eup %1155 }
 0x747   :  { %v581_v61 = vmul.f32 %v1156_v59, %v579_v33  ;;  %vm586_vm3 = vweird.f32 %v1156_v59 }
 0x748   :  { %vm587_vm5 = vmor %vm585_vm4, %vm586_vm3 }
 0x749   :  { %v582_v34 = vsub.f32 1.0, %v581_v61 }
 0x74b   :  { %v583_v62 = vmul.f32 %v1156_v59, %v582_v34 }
 0x74d   :  { %v584_v8 = vadd.f32 %v1156_v59, %v583_v62 }
 0x74f   :  { %v588_v36 = vsel %vm587_vm5, %v1156_v59, %v584_v8 }
 0x750   :  { %v593_v39 = vsel %vm590_vm6, %v592_v37, %v588_v36 }
 0x751   :  { %v599_v42 = vmul.f32 %v597_v41, %v593_v39 }
 0x7ae   :  { %v602_v38 = vpop.permute.xlu1 %601 }
 0x7af   :  { %v604_v40 = vmul.f32 %v602_v38, %v593_v39 }
 0x7b1   :  { %606 = vrot.lane.b32.xlu2 %v604_v40, %s1227_s11 }
 0x80b   :  { %v607_v43 = vpop.permute.xlu2 %606 }
 0x80c   :  { %v609_v44 = vadd.f32 %v607_v43, %v599_v42 }
 0x80e   :  { %1157 = vtanh.f32 %v609_v44  ;;  %v666_v9 = vrot.slane %v609_v44, 4 }
 0x814   :  { %v1158_v45 = vpop.eup %1157 }
 0x815   :  { %612 = vrot.lane.b32.xlu0 %v1158_v45, %s1228_s2 }
 0x887   :  { %v613_v46 = vpop.permute.xlu0 %612 }
 0x888   :  { %v615_v47 = vmul.f32 %v613_v46, %v593_v39 }
 0x88a   :  { %617 = vrot.lane.b32.xlu1 %v615_v47, %s1227_s11 }
 0x8fc   :  { %v618_v48 = vpop.permute.xlu1 %617 }
 0x8fd   :  { %1063 = vmatmul.msk.f32.vlgmr.msrb.gmra.mxu3 %vm246_vm8, %v618_v48 }
 0x980   :  { %v638_v49 = vpop.f32.mrf.mxu3 }
 0x981   :  { %v642_v50 = vrot.slane %v638_v49, 4 }
 0x983   :  { %v644_v51 = vadd.f32 %v642_v50, %v408_v27 }
 0x985   :  { %1159 = vtanh.f32 %v644_v51  ;;  %v1064_v53 = vmul.f32 -1.442695, %v644_v51 }
 0x987   :  { %1161 = vpow2.f32 %v1064_v53 }
 0x98b   :  { %v1160_v52 = vpop.eup %1159 }
 0x98c   :  { %670 = vrot.lane.b32.xlu2 %v1160_v52, %s1228_s2 }
 0x98d   :  { %v1162_v54 = vpop.eup %1161 }
 0x98e   :  { %v648_v55 = vadd.f32 1.0, %v1162_v54 }
 0x990   :  { %1163 = vrcp.f32 %v648_v55  ;;  %v660_v1 = vand.u32 2147483648, %v648_v55  ;;  %vm654_vm9 = vweird.f32 %v648_v55  ;;  %v658_v2 = vand.u32 2147483647, %v648_v55 }
 0x992   :  { %v661_v4 = vor.u32 1.1754944e-38, %v660_v1  ;;  %vm659_vm11 = vcmp.eq.f32.partialorder %v658_v2, 8.507059e+37 }
 0x996   :  { %v1164_v56 = vpop.eup %1163 }
 0x997   :  { %v650_v57 = vmul.f32 %v1164_v56, %v648_v55  ;;  %vm655_vm7 = vweird.f32 %v1164_v56 }
 0x998   :  { %vm656_vm10 = vmor %vm654_vm9, %vm655_vm7 }
 0x999   :  { %v651_v58 = vsub.f32 1.0, %v650_v57 }
 0x99b   :  { %v652_v60 = vmul.f32 %v1164_v56, %v651_v58 }
 0x99d   :  { %v653_v63 = vadd.f32 %v1164_v56, %v652_v60 }
 0x99f   :  { %v657_v3 = vsel %vm656_vm10, %v1164_v56, %v653_v63 }
 0x9a0   :  { %v662_v6 = vsel %vm659_vm11, %v661_v4, %v657_v3 }
 0x9a1   :  { %v668_v10 = vmul.f32 %v666_v9, %v662_v6 }
 0x9e6   :  { %v671_v5 = vpop.permute.xlu2 %670 }
 0x9e7   :  { %v673_v7 = vmul.f32 %v671_v5, %v662_v6 }
 0x9e9   :  { %675 = vrot.lane.b32.xlu0 %v673_v7, %s1227_s11 }
 0xa5b   :  { %v676_v11 = vpop.permute.xlu0 %675 }
 0xa5c   :  { %v678_v13 = vadd.f32 %v676_v11, %v668_v10  ;;  %v412_v11 = vpop.f32.mrf.mxu2 }
 0xa5e   :  { %1165 = vtanh.f32 %v678_v13  ;;  %v733_v0 = vrot.slane %v678_v13, 4  ;;  %v413_v13 = vadd.f32 %v1458_v30, %v412_v11 }
 0xa64   :  { %v1166_v14 = vpop.eup %1165 }
 0xa65   :  { %681 = vrot.lane.b32.xlu1 %v1166_v14, %s1228_s2 }
 0xad7   :  { %v682_v15 = vpop.permute.xlu1 %681 }
 0xad8   :  { %v684_v16 = vmul.f32 %v682_v15, %v662_v6 }
 0xada   :  { %v686_v17 = vrot.slane %v684_v16, 4 }
 0xadc   :  { %687 = vrot.lane.b32.xlu2 %v686_v17, %s1227_s11 }
 0xb36   :  { %v688_v18 = vpop.permute.xlu2 %687 }
 0xb37   :  { %1065 = vmatmul.msk.f32.vlgmr.msrb.gmra.mxu0 %vm246_vm8, %v688_v18 }
 0xbb4   :  { %v708_v21 = vpop.f32.mrf.mxu0 }
 0xbb5   :  { %v711_v22 = vadd.f32 %v708_v21, %v411_v20 }
 0xbb7   :  { %1167 = vtanh.f32 %v711_v22  ;;  %v1066_v24 = vmul.f32 -1.442695, %v711_v22 }
 0xbb9   :  { %1169 = vpow2.f32 %v1066_v24 }
 0xbbd   :  { %v1168_v23 = vpop.eup %1167 }
 0xbbe   :  { %737 = vrot.lane.b32.xlu0 %v1168_v23, %s1228_s2 }
 0xbbf   :  { %v1170_v25 = vpop.eup %1169 }
 0xbc0   :  { %v715_v26 = vadd.f32 1.0, %v1170_v25 }
 0xbc2   :  { %1171 = vrcp.f32 %v715_v26  ;;  %v727_v12 = vand.u32 2147483648, %v715_v26  ;;  %vm721_vm13 = vweird.f32 %v715_v26  ;;  %v725_v33 = vand.u32 2147483647, %v715_v26 }
 0xbc4   :  { %v728_v61 = vor.u32 1.1754944e-38, %v727_v12  ;;  %vm726_vm15 = vcmp.eq.f32.partialorder %v725_v33, 8.507059e+37 }
 0xbc8   :  { %v1172_v27 = vpop.eup %1171 }
 0xbc9   :  { %v717_v28 = vmul.f32 %v1172_v27, %v715_v26  ;;  %vm722_vm12 = vweird.f32 %v1172_v27 }
 0xbca   :  { %vm723_vm14 = vmor %vm721_vm13, %vm722_vm12 }
 0xbcb   :  { %v718_v29 = vsub.f32 1.0, %v717_v28 }
 0xbcd   :  { %v719_v31 = vmul.f32 %v1172_v27, %v718_v29 }
 0xbcf   :  { %v720_v32 = vadd.f32 %v1172_v27, %v719_v31 }
 0xbd1   :  { %v724_v59 = vsel %vm723_vm14, %v1172_v27, %v720_v32 }
 0xbd2   :  { %v729_v62 = vsel %vm726_vm15, %v728_v61, %v724_v59 }
 0xbd3   :  { %v735_v35 = vmul.f32 %v733_v0, %v729_v62 }
 0xc30   :  { %v738_v34 = vpop.permute.xlu0 %737 }
 0xc31   :  { %v740_v8 = vmul.f32 %v738_v34, %v729_v62 }
 0xc33   :  { %742 = vrot.lane.b32.xlu1 %v740_v8, %s1227_s11 }
 0xca5   :  { %v743_v36 = vpop.permute.xlu1 %742 }
 0xca6   :  { %v745_v37 = vadd.f32 %v743_v36, %v735_v35 }
 0xca8   :  { %1173 = vtanh.f32 %v745_v37  ;;  %v802_v1 = vrot.slane %v745_v37, 4 }
 0xcae   :  { %v1174_v38 = vpop.eup %1173 }
 0xcaf   :  { %748 = vrot.lane.b32.xlu2 %v1174_v38, %s1228_s2 }
 0xd09   :  { %v749_v39 = vpop.permute.xlu2 %748 }
 0xd0a   :  { %v751_v40 = vmul.f32 %v749_v39, %v729_v62 }
 0xd0c   :  { %753 = vrot.lane.b32.xlu0 %v751_v40, %s1227_s11 }
 0xd7e   :  { %v754_v41 = vpop.permute.xlu0 %753 }
 0xd7f   :  { %1067 = vmatmul.msk.f32.vlgmr.msra.gmra.mxu3 %vm246_vm8, %v754_v41 }
 0xe02   :  { %v774_v42 = vpop.f32.mrf.mxu3 }
 0xe03   :  { %v778_v43 = vrot.slane %v774_v42, 4 }
 0xe05   :  { %v780_v44 = vadd.f32 %v778_v43, %v411_v20 }
 0xe07   :  { %1175 = vtanh.f32 %v780_v44  ;;  %v1068_v46 = vmul.f32 -1.442695, %v780_v44 }
 0xe09   :  { %1177 = vpow2.f32 %v1068_v46 }
 0xe0d   :  { %v1176_v45 = vpop.eup %1175 }
 0xe0e   :  { %806 = vrot.lane.b32.xlu1 %v1176_v45, %s1228_s2 }
 0xe0f   :  { %v1178_v47 = vpop.eup %1177 }
 0xe10   :  { %v784_v48 = vadd.f32 1.0, %v1178_v47 }
 0xe12   :  { %1179 = vrcp.f32 %v784_v48  ;;  %v796_v54 = vand.u32 2147483648, %v784_v48  ;;  %vm790_vm1 = vweird.f32 %v784_v48  ;;  %v794_v55 = vand.u32 2147483647, %v784_v48 }
 0xe14   :  { %v797_v57 = vor.u32 1.1754944e-38, %v796_v54  ;;  %vm795_vm3 = vcmp.eq.f32.partialorder %v794_v55, 8.507059e+37 }
 0xe18   :  { %v1180_v49 = vpop.eup %1179 }
 0xe19   :  { %v786_v50 = vmul.f32 %v1180_v49, %v784_v48  ;;  %vm791_vm0 = vweird.f32 %v1180_v49 }
 0xe1a   :  { %vm792_vm2 = vmor %vm790_vm1, %vm791_vm0 }
 0xe1b   :  { %v787_v51 = vsub.f32 1.0, %v786_v50 }
 0xe1d   :  { %v788_v52 = vmul.f32 %v1180_v49, %v787_v51 }
 0xe1f   :  { %v789_v53 = vadd.f32 %v1180_v49, %v788_v52 }
 0xe21   :  { %v793_v56 = vsel %vm792_vm2, %v1180_v49, %v789_v53 }
 0xe22   :  { %v798_v60 = vsel %vm795_vm3, %v797_v57, %v793_v56 }
 0xe23   :  { %v804_v2 = vmul.f32 %v802_v1, %v798_v60  ;;  %v957_v1 = vld [vmem:[%s1538_s8] sm:$0xff] }
 0xe80   :  { %v807_v58 = vpop.permute.xlu1 %806 }
 0xe81   :  { %v809_v63 = vmul.f32 %v807_v58, %v798_v60  ;;  %v960_v58 = vld [vmem:[%s1538_s8 + $0x18] sm:$0xff] }
 0xe82   :  { %983 = vmatpush.msrb.mxu3 %v960_v58 }
 0xe83   :  { %811 = vrot.lane.b32.xlu2 %v809_v63, %s1227_s11  ;;  %v958_v63 = vld [vmem:[%s1538_s8 + $0x8] sm:$0xff] }
 0xedd   :  { %v812_v3 = vpop.permute.xlu2 %811 }
 0xede   :  { %v814_v4 = vadd.f32 %v812_v3, %v804_v2 }
 0xee0   :  { %1181 = vtanh.f32 %v814_v4  ;;  %v869_v32 = vrot.slane %v814_v4, 4 }
 0xee6   :  { %v1182_v5 = vpop.eup %1181 }
 0xee7   :  { %817 = vrot.lane.b32.xlu0 %v1182_v5, %s1228_s2 }
 0xf59   :  { %v818_v6 = vpop.permute.xlu0 %817 }
 0xf5a   :  { %v820_v7 = vmul.f32 %v818_v6, %v798_v60  ;;  %v959_v60 = vld [vmem:[%s1538_s8 + $0x10] sm:$0xff]  ;;  %v1134_v6 = vld [vmem:[%s1539_s9] ss:$0 sm:$0xff]  ;;  %s999_s8 = sshll.u32 %s1540_s10, 4  ;;  %s1000_s8 = int_to_ptr.hbm [resolvable:$true] %s999_s8 }
 0xf5b   :  { %984 = vmatpush.msrb.mxu3 %v959_v60 }
 0xf5c   :  { %v822_v9 = vrot.slane %v820_v7, 4 }
 0xf5d   :  { %985 = vmatpush.msrb.mxu3 %v958_v63 }
 0xf5e   :  { %823 = vrot.lane.b32.xlu1 %v822_v9, %s1227_s11 }
 0xf5f   :  { %986 = vmatpush.msrb.mxu3 %v957_v1 }
 0xfd0   :  { %v824_v10 = vpop.permute.xlu1 %823 }
 0xfd1   :  { %1069 = vmatmul.msk.f32.vlgmr.msra.gmra.mxu0 %vm246_vm8, %v824_v10 }
0x104e   :  { %v844_v14 = vpop.f32.mrf.mxu0 }
0x104f   :  { %v847_v15 = vadd.f32 %v844_v14, %v413_v13 }
0x1051   :  { %1183 = vtanh.f32 %v847_v15  ;;  %v1070_v17 = vmul.f32 -1.442695, %v847_v15 }
0x1053   :  { %1185 = vpow2.f32 %v1070_v17 }
0x1057   :  { %v1184_v16 = vpop.eup %1183 }
0x1058   :  { %873 = vrot.lane.b32.xlu2 %v1184_v16, %s1228_s2 }
0x1059   :  { %v1186_v18 = vpop.eup %1185 }
0x105a   :  { %v851_v19 = vadd.f32 1.0, %v1186_v18 }
0x105c   :  { %1187 = vrcp.f32 %v851_v19  ;;  %v863_v25 = vand.u32 2147483648, %v851_v19  ;;  %vm857_vm5 = vweird.f32 %v851_v19  ;;  %v861_v30 = vand.u32 2147483647, %v851_v19 }
0x105e   :  { %v864_v27 = vor.u32 1.1754944e-38, %v863_v25  ;;  %vm862_vm7 = vcmp.eq.f32.partialorder %v861_v30, 8.507059e+37 }
0x1062   :  { %v1188_v20 = vpop.eup %1187 }
0x1063   :  { %v853_v21 = vmul.f32 %v1188_v20, %v851_v19  ;;  %vm858_vm4 = vweird.f32 %v1188_v20 }
0x1064   :  { %vm859_vm6 = vmor %vm857_vm5, %vm858_vm4 }
0x1065   :  { %v854_v22 = vsub.f32 1.0, %v853_v21 }
0x1067   :  { %v855_v23 = vmul.f32 %v1188_v20, %v854_v22 }
0x1069   :  { %v856_v24 = vadd.f32 %v1188_v20, %v855_v23 }
0x106b   :  { %v860_v26 = vsel %vm859_vm6, %v1188_v20, %v856_v24 }
0x106c   :  { %v865_v29 = vsel %vm862_vm7, %v864_v27, %v860_v26 }
0x106d   :  { %v871_v12 = vmul.f32 %v869_v32, %v865_v29 }
0x10b2   :  { %v874_v28 = vpop.permute.xlu2 %873 }
0x10b3   :  { %v876_v31 = vmul.f32 %v874_v28, %v865_v29 }
0x10b5   :  { %878 = vrot.lane.b32.xlu0 %v876_v31, %s1227_s11 }
0x1127   :  { %v879_v33 = vpop.permute.xlu0 %878 }
0x1128   :  { %v881_v59 = vadd.f32 %v879_v33, %v871_v12 }
0x112a   :  { %1189 = vtanh.f32 %v881_v59  ;;  %v938_v53 = vrot.slane %v881_v59, 4 }
0x1130   :  { %v1190_v61 = vpop.eup %1189 }
0x1131   :  { %884 = vrot.lane.b32.xlu1 %v1190_v61, %s1228_s2 }
0x11a3   :  { %v885_v34 = vpop.permute.xlu1 %884 }
0x11a4   :  { %v887_v62 = vmul.f32 %v885_v34, %v865_v29 }
0x11a6   :  { %889 = vrot.lane.b32.xlu2 %v887_v62, %s1227_s11 }
0x1200   :  { %v890_v8 = vpop.permute.xlu2 %889 }
0x1201   :  { %1071 = vmatmul.msk.f32.vlgmr.msrb.gmra.mxu2 %vm246_vm8, %v890_v8 }
0x1284   :  { %v910_v0 = vpop.f32.mrf.mxu2 }
0x1285   :  { %v914_v35 = vrot.slane %v910_v0, 4 }
0x1287   :  { %v916_v36 = vadd.f32 %v914_v35, %v413_v13 }
0x1289   :  { %1191 = vtanh.f32 %v916_v36  ;;  %v1072_v38 = vmul.f32 -1.442695, %v916_v36 }
0x128b   :  { %1193 = vpow2.f32 %v1072_v38 }
0x128f   :  { %v1192_v37 = vpop.eup %1191 }
0x1290   :  { %942 = vrot.lane.b32.xlu0 %v1192_v37, %s1228_s2 }
0x1291   :  { %v1194_v39 = vpop.eup %1193 }
0x1292   :  { %v920_v40 = vadd.f32 1.0, %v1194_v39 }
0x1294   :  { %1195 = vrcp.f32 %v920_v40  ;;  %v932_v46 = vand.u32 2147483648, %v920_v40  ;;  %vm926_vm10 = vweird.f32 %v920_v40  ;;  %v930_v47 = vand.u32 2147483647, %v920_v40 }
0x1296   :  { %v933_v49 = vor.u32 1.1754944e-38, %v932_v46  ;;  %vm931_vm12 = vcmp.eq.f32.partialorder %v930_v47, 8.507059e+37 }
0x129a   :  { %v1196_v41 = vpop.eup %1195 }
0x129b   :  { %v922_v42 = vmul.f32 %v1196_v41, %v920_v40  ;;  %vm927_vm9 = vweird.f32 %v1196_v41 }
0x129c   :  { %vm928_vm11 = vmor %vm926_vm10, %vm927_vm9 }
0x129d   :  { %v923_v43 = vsub.f32 1.0, %v922_v42 }
0x129f   :  { %v924_v44 = vmul.f32 %v1196_v41, %v923_v43 }
0x12a1   :  { %v925_v45 = vadd.f32 %v1196_v41, %v924_v44 }
0x12a3   :  { %v929_v48 = vsel %vm928_vm11, %v1196_v41, %v925_v45 }
0x12a4   :  { %v934_v51 = vsel %vm931_vm12, %v933_v49, %v929_v48 }
0x12a5   :  { %v940_v54 = vmul.f32 %v938_v53, %v934_v51 }
0x1302   :  { %v943_v50 = vpop.permute.xlu0 %942 }
0x1303   :  { %v945_v52 = vmul.f32 %v943_v50, %v934_v51 }
0x1305   :  { %947 = vrot.lane.b32.xlu1 %v945_v52, %s1227_s11 }
0x1377   :  { %v948_v55 = vpop.permute.xlu1 %947 }
0x1378   :  { %v950_v56 = vadd.f32 %v948_v55, %v940_v54 }
0x137a   :  { %1197 = vtanh.f32 %v950_v56 }
0x1380   :  { %v1198_v57 = vpop.eup %1197 }
0x1381   :  { %953 = vrot.lane.b32.xlu2 %v1198_v57, %s1228_s2 }
0x13db   :  { %v954_v2 = vpop.permute.xlu2 %953 }
0x13dc   :  { %v956_v3 = vmul.f32 %v954_v2, %v934_v51 }
0x13de   :  { %v966_v4 = vrot.slane %v956_v3, 4 }
0x13e0   :  { %967 = vrot.lane.b32.xlu0 %v966_v4, %s1227_s11 }
0x1452   :  { %v968_v5 = vpop.permute.xlu0 %967 }
0x1453   :  { %1073 = vmatmul.msk.f32.vlgmr.msrb.gmra.mxu3 %vm246_vm8, %v968_v5 }
0x14d6   :  { %v988_v7 = vpop.f32.mrf.mxu3 }
0x14d7   :  { %v989_v9 = vadd.f32 %v1134_v6, %v988_v7 }
0x14d9   :  { %991 = vst [vmem:[#allocation2] sm:$0x3] %v989_v9 }
0x14da   :  { %1002 = dma.vmem_to_hbm [thread:$0]  %s998_s22, 32, %s1000_s8, [#allocation3]  }
0x14db   :  { %1223 = dma.done.wait [#allocation3], 32  }
0x14dc   :  { %1224 = vsyncadd [#allocation3], 4294967264 }
0x14dd   :  { %1007 = vsyncpa [#allocation3], 1 }

</bundles_post_ra>
